<compile_context>
chip_gen: v6e
topology: v6e:2x2x1
jax: 0.10.0
libtpu: 0.0.40
codegen_flags: <defaults>
</compile_context>

<pallas_src>
import jax
import jax.numpy as jnp
from jax.experimental import pallas as pl
from jax.experimental.pallas import tpu as pltpu


def _round_up(n, m):
    return ((n + m - 1) // m) * m


def _decoder_kernel(tok_ref,            # SMEM (T,) int32 (scalar prefetch)
                    emb_ref,            # (V, Hp) f32  -- full embedding table (resident)
                    h0_ref,             # (1, Hp) f32  -- initial hidden
                    wi_ref,             # (Hp, 3*Hp) bf16 -- [W_ir^T | W_iz^T | W_in^T]
                    wh_ref,             # (Hp, 3*Hp) bf16 -- [W_hr^T | W_hz^T | W_hn^T]
                    bi_ref,             # (1, 3*Hp) f32   -- b_ih per gate block
                    bh_ref,             # (1, 3*Hp) f32   -- b_hh per gate block
                    wo_ref,             # (Hp, Vp) bf16   -- out Linear weight^T
                    bo_ref,             # (1, Vp) f32     -- b_out, padded lanes = -1e30
                    logp_ref,           # out (T, Vp) f32 -- log-probs for all steps
                    hout_ref):          # out (1, Hp) f32 -- final hidden
    T = tok_ref.shape[0]
    Hp = wi_ref.shape[0]

    # ---- gather the T embedding rows in-kernel (table stays VMEM-resident) ----
    rows = [emb_ref[pl.ds(tok_ref[t], 1), :] for t in range(T)]   # T x (1, Hp)
    x = jnp.concatenate(rows, axis=0)                             # (T, Hp) f32
    # output = relu(embedding(input).view(1, 1, -1))
    x = jnp.maximum(x, 0.0)

    # ---- input-side GRU contribution for ALL steps: one batched MXU matmul ----
    gi_all = jnp.dot(x.astype(jnp.bfloat16), wi_ref[...],
                     preferred_element_type=jnp.float32) + bi_ref[...]   # (T, 3*Hp) f32

    # ---- serial recurrence: one fused h-side matmul + gate math per step ----
    h = h0_ref[...]                                               # (1, Hp) f32
    h_rows = []
    for t in range(T):
        gh = jnp.dot(h.astype(jnp.bfloat16), wh_ref[...],
                     preferred_element_type=jnp.float32) + bh_ref[...]   # (1, 3*Hp) f32
        gi = gi_all[t:t + 1, :]                                   # (1, 3*Hp) static row slice
        # PyTorch GRU gate order (r, z, n); all elementwise math in f32
        r = jax.nn.sigmoid(gi[:, 0:Hp] + gh[:, 0:Hp])
        z = jax.nn.sigmoid(gi[:, Hp:2 * Hp] + gh[:, Hp:2 * Hp])
        n = jnp.tanh(gi[:, 2 * Hp:3 * Hp] + r * gh[:, 2 * Hp:3 * Hp])
        h = (1.0 - z) * n + z * h                                 # (1, Hp) f32
        h_rows.append(h)
    h_all = jnp.concatenate(h_rows, axis=0)                       # (T, Hp) f32

    # ---- deferred output projection + log-softmax, batched over all steps ----
    # padded vocab lanes: 0 (zero w_out cols) + (-1e30 bias) = -1e30 -> exp underflows to 0
    o = jnp.dot(h_all.astype(jnp.bfloat16), wo_ref[...],
                preferred_element_type=jnp.float32) + bo_ref[...]        # (T, Vp) f32
    m = jnp.max(o, axis=1, keepdims=True)
    lse = jnp.log(jnp.sum(jnp.exp(o - m), axis=1, keepdims=True)) + m
    logp_ref[...] = o - lse                                       # one lane+sublane-dense store
    hout_ref[...] = h


def init_params(key, hidden_size, output_size):
    """Parameters in PyTorch layout (nn.Embedding / nn.GRU / nn.Linear), all f32."""
    H, V = hidden_size, output_size
    ks = jax.random.split(key, 7)
    s = 0.1
    return {
        "emb":   s * jax.random.normal(ks[0], (V, H), jnp.float32),
        "w_ih":  s * jax.random.normal(ks[1], (3 * H, H), jnp.float32),  # gate order r, z, n
        "w_hh":  s * jax.random.normal(ks[2], (3 * H, H), jnp.float32),
        "b_ih":  s * jax.random.normal(ks[3], (3 * H,), jnp.float32),
        "b_hh":  s * jax.random.normal(ks[4], (3 * H,), jnp.float32),
        "w_out": s * jax.random.normal(ks[5], (V, H), jnp.float32),
        "b_out": s * jax.random.normal(ks[6], (V,), jnp.float32),
    }


def prepare_params(p):
    """Pad lane dims to 128, transpose to (in,out), fuse the 3 GRU gates into one
       (Hp, 3*Hp) matrix per side (gate blocks at 128-lane offsets), cast MXU weights
       to bf16, and bake the vocab padding mask into b_out."""
    V, H = p["emb"].shape
    Hp = _round_up(H, 128)
    Vp = _round_up(V, 128)

    def fuse_w(w):  # (3H, H) PyTorch layout -> (Hp, 3*Hp) transposed, padded, bf16
        out = jnp.zeros((Hp, 3 * Hp), jnp.float32)
        for g in range(3):
            out = out.at[:H, g * Hp:g * Hp + H].set(w[g * H:(g + 1) * H, :].T)
        return out.astype(jnp.bfloat16)

    def fuse_b(b):  # (3H,) -> (1, 3*Hp) f32, gate blocks at 128-lane offsets
        out = jnp.zeros((1, 3 * Hp), jnp.float32)
        for g in range(3):
            out = out.at[0, g * Hp:g * Hp + H].set(b[g * H:(g + 1) * H])
        return out

    emb = jnp.zeros((V, Hp), jnp.float32).at[:, :H].set(p["emb"])          # keep f32 (tiny)
    w_out = (jnp.zeros((Hp, Vp), jnp.float32)
             .at[:H, :V].set(p["w_out"].T).astype(jnp.bfloat16))
    b_out = jnp.full((1, Vp), -1e30, jnp.float32).at[0, :V].set(p["b_out"])  # mask baked in

    return {
        "H": H, "V": V, "Hp": Hp, "Vp": Vp,
        "emb": emb,
        "w_i": fuse_w(p["w_ih"]), "w_h": fuse_w(p["w_hh"]),
        "b_i": fuse_b(p["b_ih"]), "b_h": fuse_b(p["b_hh"]),
        "w_out": w_out, "b_out": b_out,
    }


def decoder_forward_steps(tokens, hidden, prep):
    """Run T teacher-forced decode steps in ONE pallas_call (grid=(1,)).
       tokens: (T,) int32; hidden: (1, 1, H) f32.
       Returns (log_probs (T, V), final hidden (1, 1, H))."""
    H, V, Hp, Vp = prep["H"], prep["V"], prep["Hp"], prep["Vp"]
    T = int(tokens.shape[0])

    h0 = jnp.zeros((1, Hp), jnp.float32).at[:, :H].set(hidden.reshape(1, H))

    const = lambda i, tok: (0, 0)   # everything is a single resident block

    grid_spec = pltpu.PrefetchScalarGridSpec(
        num_scalar_prefetch=1,          # token ids -> SMEM, read in-kernel
        grid=(1,),
        in_specs=[
            pl.BlockSpec((V, Hp), const),        # embedding table (f32)
            pl.BlockSpec((1, Hp), const),        # h0
            pl.BlockSpec((Hp, 3 * Hp), const),   # fused W_i (bf16)
            pl.BlockSpec((Hp, 3 * Hp), const),   # fused W_h (bf16)
            pl.BlockSpec((1, 3 * Hp), const),    # b_i
            pl.BlockSpec((1, 3 * Hp), const),    # b_h
            pl.BlockSpec((Hp, Vp), const),       # w_out (bf16)
            pl.BlockSpec((1, Vp), const),        # b_out (padded lanes -1e30)
        ],
        out_specs=(
            pl.BlockSpec((T, Vp), const),        # all log-prob rows, stored once
            pl.BlockSpec((1, Hp), const),        # final hidden
        ),
    )

    logp, hout = pl.pallas_call(
        _decoder_kernel,
        grid_spec=grid_spec,
        out_shape=(
            jax.ShapeDtypeStruct((T, Vp), jnp.float32),
            jax.ShapeDtypeStruct((1, Hp), jnp.float32),
        ),
        compiler_params=pltpu.CompilerParams(
            dimension_semantics=("arbitrary",)),
    )(
        tokens.astype(jnp.int32),
        prep["emb"], h0,
        prep["w_i"], prep["w_h"], prep["b_i"], prep["b_h"],
        prep["w_out"], prep["b_out"],
    )
    return logp[:, :V], hout[:, :H].reshape(1, 1, H)


def decoder_forward(token, hidden, prep):
    """Single step, matching DecoderRNN.forward(input, hidden) -> (log_probs (1,V), hidden (1,1,H))."""
    logp, h_new = decoder_forward_steps(jnp.reshape(token, (1,)).astype(jnp.int32), hidden, prep)
    return logp, h_new


def decoder_ref_steps(tokens, hidden, p):
    """Pure-JAX f32 reference (PyTorch semantics) for correctness checking."""
    V, H = p["emb"].shape
    h = hidden.reshape(1, H)
    outs = []
    for t in range(tokens.shape[0]):
        x = jnp.maximum(p["emb"][tokens[t]], 0.0)[None, :]
        gi = x @ p["w_ih"].T + p["b_ih"][None, :]
        gh = h @ p["w_hh"].T + p["b_hh"][None, :]
        r = jax.nn.sigmoid(gi[:, 0:H] + gh[:, 0:H])
        z = jax.nn.sigmoid(gi[:, H:2 * H] + gh[:, H:2 * H])
        n = jnp.tanh(gi[:, 2 * H:] + r * gh[:, 2 * H:])
        h = (1.0 - z) * n + z * h
        o = h @ p["w_out"].T + p["b_out"][None, :]
        outs.append(jax.nn.log_softmax(o, axis=1))
    return jnp.concatenate(outs, axis=0), h.reshape(1, 1, H)


if __name__ == "__main__":
    hidden_size, output_size, num_steps = 32, 64, 8

    key = jax.random.PRNGKey(0)
    k_param, k_h, k_tok = jax.random.split(key, 3)

    params = init_params(k_param, hidden_size, output_size)
    prep = prepare_params(params)

    tokens = jax.random.randint(k_tok, (num_steps,), 0, output_size, dtype=jnp.int32)
    hidden = 0.1 * jax.random.normal(k_h, (1, 1, hidden_size), jnp.float32)

    # fused multi-step decode: one kernel launch, weights resident, one dense output store
    log_probs, new_hidden = decoder_forward_steps(tokens, hidden, prep)
    jax.block_until_ready((log_probs, new_hidden))
    assert log_probs.shape == (num_steps, output_size)
    assert new_hidden.shape == (1, 1, hidden_size)

    # single-step call with the module's forward(input, hidden) signature
    log_probs1, hidden1 = decoder_forward(tokens[:1], hidden, prep)
    jax.block_until_ready((log_probs1, hidden1))
    assert log_probs1.shape == (1, output_size)
    assert hidden1.shape == (1, 1, hidden_size)

    # check against pure-JAX f32 reference (kernel uses bf16 MXU weights -> loose tol)
    ref_lp, ref_h = decoder_ref_steps(tokens, hidden, params)
    assert float(jnp.max(jnp.abs(log_probs - ref_lp))) < 5e-2
    assert float(jnp.max(jnp.abs(new_hidden - ref_h))) < 5e-2
    assert float(jnp.max(jnp.abs(log_probs1 - ref_lp[0:1]))) < 5e-2

    print("KERNEL_OK")
</pallas_src>

<mosaic_0001>
module attributes {stable_mosaic.version = 11 : i64} {
  func.func @_decoder_kernel(%arg0: i32, %arg1: memref<8xi32, #tpu.memory_space<smem>>, %arg2: memref<64x128xf32, #tpu.memory_space<vmem>>, %arg3: memref<1x128xf32, #tpu.memory_space<vmem>>, %arg4: memref<128x384xbf16, #tpu.memory_space<vmem>>, %arg5: memref<128x384xbf16, #tpu.memory_space<vmem>>, %arg6: memref<1x384xf32, #tpu.memory_space<vmem>>, %arg7: memref<1x384xf32, #tpu.memory_space<vmem>>, %arg8: memref<128x128xbf16, #tpu.memory_space<vmem>>, %arg9: memref<1x128xf32, #tpu.memory_space<vmem>>, %arg10: memref<8x128xf32, #tpu.memory_space<vmem>>, %arg11: memref<1x128xf32, #tpu.memory_space<vmem>>) attributes {dimension_semantics = [#tpu.dimension_semantics<arbitrary>], iteration_bounds = array<i64: 1>, scalar_prefetch = 1 : i64, scratch_operands = 0 : i64, tpu.core_type = #tpu.core_type<tc>, window_params = [{pipeline_mode = #tpu.pipeline_mode<synchronous>, transform_indices = @transform_0, window_bounds = array<i64: 64, 128>}, {pipeline_mode = #tpu.pipeline_mode<synchronous>, transform_indices = @transform_1, window_bounds = array<i64: 1, 128>}, {pipeline_mode = #tpu.pipeline_mode<synchronous>, transform_indices = @transform_2, window_bounds = array<i64: 128, 384>}, {pipeline_mode = #tpu.pipeline_mode<synchronous>, transform_indices = @transform_3, window_bounds = array<i64: 128, 384>}, {pipeline_mode = #tpu.pipeline_mode<synchronous>, transform_indices = @transform_4, window_bounds = array<i64: 1, 384>}, {pipeline_mode = #tpu.pipeline_mode<synchronous>, transform_indices = @transform_5, window_bounds = array<i64: 1, 384>}, {pipeline_mode = #tpu.pipeline_mode<synchronous>, transform_indices = @transform_6, window_bounds = array<i64: 128, 128>}, {pipeline_mode = #tpu.pipeline_mode<synchronous>, transform_indices = @transform_7, window_bounds = array<i64: 1, 128>}, {pipeline_mode = #tpu.pipeline_mode<synchronous>, transform_indices = @transform_8, window_bounds = array<i64: 8, 128>}, {pipeline_mode = #tpu.pipeline_mode<synchronous>, transform_indices = @transform_9, window_bounds = array<i64: 1, 128>}]} {
    %c0 = arith.constant 0 : index
    %0 = memref.load %arg1[%c0] : memref<8xi32, #tpu.memory_space<smem>>
    %1 = arith.index_cast %0 : i32 to index
    %c0_0 = arith.constant 0 : index
    %2 = vector.load %arg2[%1, %c0_0] : memref<64x128xf32, #tpu.memory_space<vmem>>, vector<1x128xf32>
    %c1 = arith.constant 1 : index
    %3 = memref.load %arg1[%c1] : memref<8xi32, #tpu.memory_space<smem>>
    %4 = arith.index_cast %3 : i32 to index
    %c0_1 = arith.constant 0 : index
    %5 = vector.load %arg2[%4, %c0_1] : memref<64x128xf32, #tpu.memory_space<vmem>>, vector<1x128xf32>
    %c2 = arith.constant 2 : index
    %6 = memref.load %arg1[%c2] : memref<8xi32, #tpu.memory_space<smem>>
    %7 = arith.index_cast %6 : i32 to index
    %c0_2 = arith.constant 0 : index
    %8 = vector.load %arg2[%7, %c0_2] : memref<64x128xf32, #tpu.memory_space<vmem>>, vector<1x128xf32>
    %c3 = arith.constant 3 : index
    %9 = memref.load %arg1[%c3] : memref<8xi32, #tpu.memory_space<smem>>
    %10 = arith.index_cast %9 : i32 to index
    %c0_3 = arith.constant 0 : index
    %11 = vector.load %arg2[%10, %c0_3] : memref<64x128xf32, #tpu.memory_space<vmem>>, vector<1x128xf32>
    %c4 = arith.constant 4 : index
    %12 = memref.load %arg1[%c4] : memref<8xi32, #tpu.memory_space<smem>>
    %13 = arith.index_cast %12 : i32 to index
    %c0_4 = arith.constant 0 : index
    %14 = vector.load %arg2[%13, %c0_4] : memref<64x128xf32, #tpu.memory_space<vmem>>, vector<1x128xf32>
    %c5 = arith.constant 5 : index
    %15 = memref.load %arg1[%c5] : memref<8xi32, #tpu.memory_space<smem>>
    %16 = arith.index_cast %15 : i32 to index
    %c0_5 = arith.constant 0 : index
    %17 = vector.load %arg2[%16, %c0_5] : memref<64x128xf32, #tpu.memory_space<vmem>>, vector<1x128xf32>
    %c6 = arith.constant 6 : index
    %18 = memref.load %arg1[%c6] : memref<8xi32, #tpu.memory_space<smem>>
    %19 = arith.index_cast %18 : i32 to index
    %c0_6 = arith.constant 0 : index
    %20 = vector.load %arg2[%19, %c0_6] : memref<64x128xf32, #tpu.memory_space<vmem>>, vector<1x128xf32>
    %c7 = arith.constant 7 : index
    %21 = memref.load %arg1[%c7] : memref<8xi32, #tpu.memory_space<smem>>
    %22 = arith.index_cast %21 : i32 to index
    %c0_7 = arith.constant 0 : index
    %23 = vector.load %arg2[%22, %c0_7] : memref<64x128xf32, #tpu.memory_space<vmem>>, vector<1x128xf32>
    %24 = tpu.concatenate %2, %5, %8, %11, %14, %17, %20, %23 in 0 : vector<1x128xf32>, vector<1x128xf32>, vector<1x128xf32>, vector<1x128xf32>, vector<1x128xf32>, vector<1x128xf32>, vector<1x128xf32>, vector<1x128xf32> -> vector<8x128xf32>
    %cst = arith.constant 0.000000e+00 : f32
    %25 = vector.broadcast %cst : f32 to vector<8x128xf32>
    %26 = arith.maximumf %24, %25 : vector<8x128xf32>
    %27 = arith.truncf %26 : vector<8x128xf32> to vector<8x128xbf16>
    %c0_8 = arith.constant 0 : index
    %c0_9 = arith.constant 0 : index
    %28 = vector.load %arg4[%c0_8, %c0_9] : memref<128x384xbf16, #tpu.memory_space<vmem>>, vector<128x384xbf16>
    %cst_10 = arith.constant dense<0.000000e+00> : vector<8x384xf32>
    %29 = tpu.matmul %27, %28, %cst_10 {dimension_numbers = #tpu.dot_dimension_numbers<[1], [0], [0], [1], [0, 0, 1, 1], [], []>} : vector<8x128xbf16>, vector<128x384xbf16>, vector<8x384xf32> -> vector<8x384xf32>
    %c0_11 = arith.constant 0 : index
    %c0_12 = arith.constant 0 : index
    %30 = vector.load %arg6[%c0_11, %c0_12] : memref<1x384xf32, #tpu.memory_space<vmem>>, vector<1x384xf32>
    %31 = vector.broadcast %30 : vector<1x384xf32> to vector<8x384xf32>
    %32 = arith.addf %29, %31 : vector<8x384xf32>
    %c0_13 = arith.constant 0 : index
    %c0_14 = arith.constant 0 : index
    %33 = vector.load %arg3[%c0_13, %c0_14] : memref<1x128xf32, #tpu.memory_space<vmem>>, vector<1x128xf32>
    %34 = arith.truncf %33 : vector<1x128xf32> to vector<1x128xbf16>
    %c0_15 = arith.constant 0 : index
    %c0_16 = arith.constant 0 : index
    %35 = vector.load %arg5[%c0_15, %c0_16] : memref<128x384xbf16, #tpu.memory_space<vmem>>, vector<128x384xbf16>
    %cst_17 = arith.constant dense<0.000000e+00> : vector<1x384xf32>
    %36 = tpu.matmul %34, %35, %cst_17 {dimension_numbers = #tpu.dot_dimension_numbers<[1], [0], [0], [1], [0, 0, 1, 1], [], []>} : vector<1x128xbf16>, vector<128x384xbf16>, vector<1x384xf32> -> vector<1x384xf32>
    %c0_18 = arith.constant 0 : index
    %c0_19 = arith.constant 0 : index
    %37 = vector.load %arg7[%c0_18, %c0_19] : memref<1x384xf32, #tpu.memory_space<vmem>>, vector<1x384xf32>
    %38 = arith.addf %36, %37 : vector<1x384xf32>
    %39 = vector.extract_strided_slice %32 {offsets = [0, 0], sizes = [1, 384], strides = [1, 1]} : vector<8x384xf32> to vector<1x384xf32>
    %40 = vector.extract_strided_slice %39 {offsets = [0, 0], sizes = [1, 128], strides = [1, 1]} : vector<1x384xf32> to vector<1x128xf32>
    %41 = vector.extract_strided_slice %38 {offsets = [0, 0], sizes = [1, 128], strides = [1, 1]} : vector<1x384xf32> to vector<1x128xf32>
    %42 = arith.addf %40, %41 : vector<1x128xf32>
    %43 = arith.negf %42 : vector<1x128xf32>
    %44 = math.exp %43 : vector<1x128xf32>
    %cst_20 = arith.constant 1.000000e+00 : f32
    %45 = vector.broadcast %cst_20 : f32 to vector<1x128xf32>
    %46 = arith.addf %45, %44 : vector<1x128xf32>
    %47 = arith.divf %45, %46 : vector<1x128xf32>
    %48 = vector.extract_strided_slice %39 {offsets = [0, 128], sizes = [1, 128], strides = [1, 1]} : vector<1x384xf32> to vector<1x128xf32>
    %49 = vector.extract_strided_slice %38 {offsets = [0, 128], sizes = [1, 128], strides = [1, 1]} : vector<1x384xf32> to vector<1x128xf32>
    %50 = arith.addf %48, %49 : vector<1x128xf32>
    %51 = arith.negf %50 : vector<1x128xf32>
    %52 = math.exp %51 : vector<1x128xf32>
    %cst_21 = arith.constant 1.000000e+00 : f32
    %53 = vector.broadcast %cst_21 : f32 to vector<1x128xf32>
    %54 = arith.addf %53, %52 : vector<1x128xf32>
    %55 = arith.divf %53, %54 : vector<1x128xf32>
    %56 = vector.extract_strided_slice %39 {offsets = [0, 256], sizes = [1, 128], strides = [1, 1]} : vector<1x384xf32> to vector<1x128xf32>
    %57 = vector.extract_strided_slice %38 {offsets = [0, 256], sizes = [1, 128], strides = [1, 1]} : vector<1x384xf32> to vector<1x128xf32>
    %58 = arith.mulf %47, %57 : vector<1x128xf32>
    %59 = arith.addf %56, %58 : vector<1x128xf32>
    %60 = math.tanh %59 : vector<1x128xf32>
    %cst_22 = arith.constant 1.000000e+00 : f32
    %61 = vector.broadcast %cst_22 : f32 to vector<1x128xf32>
    %62 = arith.subf %61, %55 : vector<1x128xf32>
    %63 = arith.mulf %62, %60 : vector<1x128xf32>
    %64 = arith.mulf %55, %33 : vector<1x128xf32>
    %65 = arith.addf %63, %64 : vector<1x128xf32>
    %66 = arith.truncf %65 : vector<1x128xf32> to vector<1x128xbf16>
    %c0_23 = arith.constant 0 : index
    %c0_24 = arith.constant 0 : index
    %67 = vector.load %arg5[%c0_23, %c0_24] : memref<128x384xbf16, #tpu.memory_space<vmem>>, vector<128x384xbf16>
    %cst_25 = arith.constant dense<0.000000e+00> : vector<1x384xf32>
    %68 = tpu.matmul %66, %67, %cst_25 {dimension_numbers = #tpu.dot_dimension_numbers<[1], [0], [0], [1], [0, 0, 1, 1], [], []>} : vector<1x128xbf16>, vector<128x384xbf16>, vector<1x384xf32> -> vector<1x384xf32>
    %c0_26 = arith.constant 0 : index
    %c0_27 = arith.constant 0 : index
    %69 = vector.load %arg7[%c0_26, %c0_27] : memref<1x384xf32, #tpu.memory_space<vmem>>, vector<1x384xf32>
    %70 = arith.addf %68, %69 : vector<1x384xf32>
    %71 = vector.extract_strided_slice %32 {offsets = [1, 0], sizes = [1, 384], strides = [1, 1]} : vector<8x384xf32> to vector<1x384xf32>
    %72 = vector.extract_strided_slice %71 {offsets = [0, 0], sizes = [1, 128], strides = [1, 1]} : vector<1x384xf32> to vector<1x128xf32>
    %73 = vector.extract_strided_slice %70 {offsets = [0, 0], sizes = [1, 128], strides = [1, 1]} : vector<1x384xf32> to vector<1x128xf32>
    %74 = arith.addf %72, %73 : vector<1x128xf32>
    %75 = arith.negf %74 : vector<1x128xf32>
    %76 = math.exp %75 : vector<1x128xf32>
    %cst_28 = arith.constant 1.000000e+00 : f32
    %77 = vector.broadcast %cst_28 : f32 to vector<1x128xf32>
    %78 = arith.addf %77, %76 : vector<1x128xf32>
    %79 = arith.divf %77, %78 : vector<1x128xf32>
    %80 = vector.extract_strided_slice %71 {offsets = [0, 128], sizes = [1, 128], strides = [1, 1]} : vector<1x384xf32> to vector<1x128xf32>
    %81 = vector.extract_strided_slice %70 {offsets = [0, 128], sizes = [1, 128], strides = [1, 1]} : vector<1x384xf32> to vector<1x128xf32>
    %82 = arith.addf %80, %81 : vector<1x128xf32>
    %83 = arith.negf %82 : vector<1x128xf32>
    %84 = math.exp %83 : vector<1x128xf32>
    %cst_29 = arith.constant 1.000000e+00 : f32
    %85 = vector.broadcast %cst_29 : f32 to vector<1x128xf32>
    %86 = arith.addf %85, %84 : vector<1x128xf32>
    %87 = arith.divf %85, %86 : vector<1x128xf32>
    %88 = vector.extract_strided_slice %71 {offsets = [0, 256], sizes = [1, 128], strides = [1, 1]} : vector<1x384xf32> to vector<1x128xf32>
    %89 = vector.extract_strided_slice %70 {offsets = [0, 256], sizes = [1, 128], strides = [1, 1]} : vector<1x384xf32> to vector<1x128xf32>
    %90 = arith.mulf %79, %89 : vector<1x128xf32>
    %91 = arith.addf %88, %90 : vector<1x128xf32>
    %92 = math.tanh %91 : vector<1x128xf32>
    %cst_30 = arith.constant 1.000000e+00 : f32
    %93 = vector.broadcast %cst_30 : f32 to vector<1x128xf32>
    %94 = arith.subf %93, %87 : vector<1x128xf32>
    %95 = arith.mulf %94, %92 : vector<1x128xf32>
    %96 = arith.mulf %87, %65 : vector<1x128xf32>
    %97 = arith.addf %95, %96 : vector<1x128xf32>
    %98 = arith.truncf %97 : vector<1x128xf32> to vector<1x128xbf16>
    %c0_31 = arith.constant 0 : index
    %c0_32 = arith.constant 0 : index
    %99 = vector.load %arg5[%c0_31, %c0_32] : memref<128x384xbf16, #tpu.memory_space<vmem>>, vector<128x384xbf16>
    %cst_33 = arith.constant dense<0.000000e+00> : vector<1x384xf32>
    %100 = tpu.matmul %98, %99, %cst_33 {dimension_numbers = #tpu.dot_dimension_numbers<[1], [0], [0], [1], [0, 0, 1, 1], [], []>} : vector<1x128xbf16>, vector<128x384xbf16>, vector<1x384xf32> -> vector<1x384xf32>
    %c0_34 = arith.constant 0 : index
    %c0_35 = arith.constant 0 : index
    %101 = vector.load %arg7[%c0_34, %c0_35] : memref<1x384xf32, #tpu.memory_space<vmem>>, vector<1x384xf32>
    %102 = arith.addf %100, %101 : vector<1x384xf32>
    %103 = vector.extract_strided_slice %32 {offsets = [2, 0], sizes = [1, 384], strides = [1, 1]} : vector<8x384xf32> to vector<1x384xf32>
    %104 = vector.extract_strided_slice %103 {offsets = [0, 0], sizes = [1, 128], strides = [1, 1]} : vector<1x384xf32> to vector<1x128xf32>
    %105 = vector.extract_strided_slice %102 {offsets = [0, 0], sizes = [1, 128], strides = [1, 1]} : vector<1x384xf32> to vector<1x128xf32>
    %106 = arith.addf %104, %105 : vector<1x128xf32>
    %107 = arith.negf %106 : vector<1x128xf32>
    %108 = math.exp %107 : vector<1x128xf32>
    %cst_36 = arith.constant 1.000000e+00 : f32
    %109 = vector.broadcast %cst_36 : f32 to vector<1x128xf32>
    %110 = arith.addf %109, %108 : vector<1x128xf32>
    %111 = arith.divf %109, %110 : vector<1x128xf32>
    %112 = vector.extract_strided_slice %103 {offsets = [0, 128], sizes = [1, 128], strides = [1, 1]} : vector<1x384xf32> to vector<1x128xf32>
    %113 = vector.extract_strided_slice %102 {offsets = [0, 128], sizes = [1, 128], strides = [1, 1]} : vector<1x384xf32> to vector<1x128xf32>
    %114 = arith.addf %112, %113 : vector<1x128xf32>
    %115 = arith.negf %114 : vector<1x128xf32>
    %116 = math.exp %115 : vector<1x128xf32>
    %cst_37 = arith.constant 1.000000e+00 : f32
    %117 = vector.broadcast %cst_37 : f32 to vector<1x128xf32>
    %118 = arith.addf %117, %116 : vector<1x128xf32>
    %119 = arith.divf %117, %118 : vector<1x128xf32>
    %120 = vector.extract_strided_slice %103 {offsets = [0, 256], sizes = [1, 128], strides = [1, 1]} : vector<1x384xf32> to vector<1x128xf32>
    %121 = vector.extract_strided_slice %102 {offsets = [0, 256], sizes = [1, 128], strides = [1, 1]} : vector<1x384xf32> to vector<1x128xf32>
    %122 = arith.mulf %111, %121 : vector<1x128xf32>
    %123 = arith.addf %120, %122 : vector<1x128xf32>
    %124 = math.tanh %123 : vector<1x128xf32>
    %cst_38 = arith.constant 1.000000e+00 : f32
    %125 = vector.broadcast %cst_38 : f32 to vector<1x128xf32>
    %126 = arith.subf %125, %119 : vector<1x128xf32>
    %127 = arith.mulf %126, %124 : vector<1x128xf32>
    %128 = arith.mulf %119, %97 : vector<1x128xf32>
    %129 = arith.addf %127, %128 : vector<1x128xf32>
    %130 = arith.truncf %129 : vector<1x128xf32> to vector<1x128xbf16>
    %c0_39 = arith.constant 0 : index
    %c0_40 = arith.constant 0 : index
    %131 = vector.load %arg5[%c0_39, %c0_40] : memref<128x384xbf16, #tpu.memory_space<vmem>>, vector<128x384xbf16>
    %cst_41 = arith.constant dense<0.000000e+00> : vector<1x384xf32>
    %132 = tpu.matmul %130, %131, %cst_41 {dimension_numbers = #tpu.dot_dimension_numbers<[1], [0], [0], [1], [0, 0, 1, 1], [], []>} : vector<1x128xbf16>, vector<128x384xbf16>, vector<1x384xf32> -> vector<1x384xf32>
    %c0_42 = arith.constant 0 : index
    %c0_43 = arith.constant 0 : index
    %133 = vector.load %arg7[%c0_42, %c0_43] : memref<1x384xf32, #tpu.memory_space<vmem>>, vector<1x384xf32>
    %134 = arith.addf %132, %133 : vector<1x384xf32>
    %135 = vector.extract_strided_slice %32 {offsets = [3, 0], sizes = [1, 384], strides = [1, 1]} : vector<8x384xf32> to vector<1x384xf32>
    %136 = vector.extract_strided_slice %135 {offsets = [0, 0], sizes = [1, 128], strides = [1, 1]} : vector<1x384xf32> to vector<1x128xf32>
    %137 = vector.extract_strided_slice %134 {offsets = [0, 0], sizes = [1, 128], strides = [1, 1]} : vector<1x384xf32> to vector<1x128xf32>
    %138 = arith.addf %136, %137 : vector<1x128xf32>
    %139 = arith.negf %138 : vector<1x128xf32>
    %140 = math.exp %139 : vector<1x128xf32>
    %cst_44 = arith.constant 1.000000e+00 : f32
    %141 = vector.broadcast %cst_44 : f32 to vector<1x128xf32>
    %142 = arith.addf %141, %140 : vector<1x128xf32>
    %143 = arith.divf %141, %142 : vector<1x128xf32>
    %144 = vector.extract_strided_slice %135 {offsets = [0, 128], sizes = [1, 128], strides = [1, 1]} : vector<1x384xf32> to vector<1x128xf32>
    %145 = vector.extract_strided_slice %134 {offsets = [0, 128], sizes = [1, 128], strides = [1, 1]} : vector<1x384xf32> to vector<1x128xf32>
    %146 = arith.addf %144, %145 : vector<1x128xf32>
    %147 = arith.negf %146 : vector<1x128xf32>
    %148 = math.exp %147 : vector<1x128xf32>
    %cst_45 = arith.constant 1.000000e+00 : f32
    %149 = vector.broadcast %cst_45 : f32 to vector<1x128xf32>
    %150 = arith.addf %149, %148 : vector<1x128xf32>
    %151 = arith.divf %149, %150 : vector<1x128xf32>
    %152 = vector.extract_strided_slice %135 {offsets = [0, 256], sizes = [1, 128], strides = [1, 1]} : vector<1x384xf32> to vector<1x128xf32>
    %153 = vector.extract_strided_slice %134 {offsets = [0, 256], sizes = [1, 128], strides = [1, 1]} : vector<1x384xf32> to vector<1x128xf32>
    %154 = arith.mulf %143, %153 : vector<1x128xf32>
    %155 = arith.addf %152, %154 : vector<1x128xf32>
    %156 = math.tanh %155 : vector<1x128xf32>
    %cst_46 = arith.constant 1.000000e+00 : f32
    %157 = vector.broadcast %cst_46 : f32 to vector<1x128xf32>
    %158 = arith.subf %157, %151 : vector<1x128xf32>
    %159 = arith.mulf %158, %156 : vector<1x128xf32>
    %160 = arith.mulf %151, %129 : vector<1x128xf32>
    %161 = arith.addf %159, %160 : vector<1x128xf32>
    %162 = arith.truncf %161 : vector<1x128xf32> to vector<1x128xbf16>
    %c0_47 = arith.constant 0 : index
    %c0_48 = arith.constant 0 : index
    %163 = vector.load %arg5[%c0_47, %c0_48] : memref<128x384xbf16, #tpu.memory_space<vmem>>, vector<128x384xbf16>
    %cst_49 = arith.constant dense<0.000000e+00> : vector<1x384xf32>
    %164 = tpu.matmul %162, %163, %cst_49 {dimension_numbers = #tpu.dot_dimension_numbers<[1], [0], [0], [1], [0, 0, 1, 1], [], []>} : vector<1x128xbf16>, vector<128x384xbf16>, vector<1x384xf32> -> vector<1x384xf32>
    %c0_50 = arith.constant 0 : index
    %c0_51 = arith.constant 0 : index
    %165 = vector.load %arg7[%c0_50, %c0_51] : memref<1x384xf32, #tpu.memory_space<vmem>>, vector<1x384xf32>
    %166 = arith.addf %164, %165 : vector<1x384xf32>
    %167 = vector.extract_strided_slice %32 {offsets = [4, 0], sizes = [1, 384], strides = [1, 1]} : vector<8x384xf32> to vector<1x384xf32>
    %168 = vector.extract_strided_slice %167 {offsets = [0, 0], sizes = [1, 128], strides = [1, 1]} : vector<1x384xf32> to vector<1x128xf32>
    %169 = vector.extract_strided_slice %166 {offsets = [0, 0], sizes = [1, 128], strides = [1, 1]} : vector<1x384xf32> to vector<1x128xf32>
    %170 = arith.addf %168, %169 : vector<1x128xf32>
    %171 = arith.negf %170 : vector<1x128xf32>
    %172 = math.exp %171 : vector<1x128xf32>
    %cst_52 = arith.constant 1.000000e+00 : f32
    %173 = vector.broadcast %cst_52 : f32 to vector<1x128xf32>
    %174 = arith.addf %173, %172 : vector<1x128xf32>
    %175 = arith.divf %173, %174 : vector<1x128xf32>
    %176 = vector.extract_strided_slice %167 {offsets = [0, 128], sizes = [1, 128], strides = [1, 1]} : vector<1x384xf32> to vector<1x128xf32>
    %177 = vector.extract_strided_slice %166 {offsets = [0, 128], sizes = [1, 128], strides = [1, 1]} : vector<1x384xf32> to vector<1x128xf32>
    %178 = arith.addf %176, %177 : vector<1x128xf32>
    %179 = arith.negf %178 : vector<1x128xf32>
    %180 = math.exp %179 : vector<1x128xf32>
    %cst_53 = arith.constant 1.000000e+00 : f32
    %181 = vector.broadcast %cst_53 : f32 to vector<1x128xf32>
    %182 = arith.addf %181, %180 : vector<1x128xf32>
    %183 = arith.divf %181, %182 : vector<1x128xf32>
    %184 = vector.extract_strided_slice %167 {offsets = [0, 256], sizes = [1, 128], strides = [1, 1]} : vector<1x384xf32> to vector<1x128xf32>
    %185 = vector.extract_strided_slice %166 {offsets = [0, 256], sizes = [1, 128], strides = [1, 1]} : vector<1x384xf32> to vector<1x128xf32>
    %186 = arith.mulf %175, %185 : vector<1x128xf32>
    %187 = arith.addf %184, %186 : vector<1x128xf32>
    %188 = math.tanh %187 : vector<1x128xf32>
    %cst_54 = arith.constant 1.000000e+00 : f32
    %189 = vector.broadcast %cst_54 : f32 to vector<1x128xf32>
    %190 = arith.subf %189, %183 : vector<1x128xf32>
    %191 = arith.mulf %190, %188 : vector<1x128xf32>
    %192 = arith.mulf %183, %161 : vector<1x128xf32>
    %193 = arith.addf %191, %192 : vector<1x128xf32>
    %194 = arith.truncf %193 : vector<1x128xf32> to vector<1x128xbf16>
    %c0_55 = arith.constant 0 : index
    %c0_56 = arith.constant 0 : index
    %195 = vector.load %arg5[%c0_55, %c0_56] : memref<128x384xbf16, #tpu.memory_space<vmem>>, vector<128x384xbf16>
    %cst_57 = arith.constant dense<0.000000e+00> : vector<1x384xf32>
    %196 = tpu.matmul %194, %195, %cst_57 {dimension_numbers = #tpu.dot_dimension_numbers<[1], [0], [0], [1], [0, 0, 1, 1], [], []>} : vector<1x128xbf16>, vector<128x384xbf16>, vector<1x384xf32> -> vector<1x384xf32>
    %c0_58 = arith.constant 0 : index
    %c0_59 = arith.constant 0 : index
    %197 = vector.load %arg7[%c0_58, %c0_59] : memref<1x384xf32, #tpu.memory_space<vmem>>, vector<1x384xf32>
    %198 = arith.addf %196, %197 : vector<1x384xf32>
    %199 = vector.extract_strided_slice %32 {offsets = [5, 0], sizes = [1, 384], strides = [1, 1]} : vector<8x384xf32> to vector<1x384xf32>
    %200 = vector.extract_strided_slice %199 {offsets = [0, 0], sizes = [1, 128], strides = [1, 1]} : vector<1x384xf32> to vector<1x128xf32>
    %201 = vector.extract_strided_slice %198 {offsets = [0, 0], sizes = [1, 128], strides = [1, 1]} : vector<1x384xf32> to vector<1x128xf32>
    %202 = arith.addf %200, %201 : vector<1x128xf32>
    %203 = arith.negf %202 : vector<1x128xf32>
    %204 = math.exp %203 : vector<1x128xf32>
    %cst_60 = arith.constant 1.000000e+00 : f32
    %205 = vector.broadcast %cst_60 : f32 to vector<1x128xf32>
    %206 = arith.addf %205, %204 : vector<1x128xf32>
    %207 = arith.divf %205, %206 : vector<1x128xf32>
    %208 = vector.extract_strided_slice %199 {offsets = [0, 128], sizes = [1, 128], strides = [1, 1]} : vector<1x384xf32> to vector<1x128xf32>
    %209 = vector.extract_strided_slice %198 {offsets = [0, 128], sizes = [1, 128], strides = [1, 1]} : vector<1x384xf32> to vector<1x128xf32>
    %210 = arith.addf %208, %209 : vector<1x128xf32>
    %211 = arith.negf %210 : vector<1x128xf32>
    %212 = math.exp %211 : vector<1x128xf32>
    %cst_61 = arith.constant 1.000000e+00 : f32
    %213 = vector.broadcast %cst_61 : f32 to vector<1x128xf32>
    %214 = arith.addf %213, %212 : vector<1x128xf32>
    %215 = arith.divf %213, %214 : vector<1x128xf32>
    %216 = vector.extract_strided_slice %199 {offsets = [0, 256], sizes = [1, 128], strides = [1, 1]} : vector<1x384xf32> to vector<1x128xf32>
    %217 = vector.extract_strided_slice %198 {offsets = [0, 256], sizes = [1, 128], strides = [1, 1]} : vector<1x384xf32> to vector<1x128xf32>
    %218 = arith.mulf %207, %217 : vector<1x128xf32>
    %219 = arith.addf %216, %218 : vector<1x128xf32>
    %220 = math.tanh %219 : vector<1x128xf32>
    %cst_62 = arith.constant 1.000000e+00 : f32
    %221 = vector.broadcast %cst_62 : f32 to vector<1x128xf32>
    %222 = arith.subf %221, %215 : vector<1x128xf32>
    %223 = arith.mulf %222, %220 : vector<1x128xf32>
    %224 = arith.mulf %215, %193 : vector<1x128xf32>
    %225 = arith.addf %223, %224 : vector<1x128xf32>
    %226 = arith.truncf %225 : vector<1x128xf32> to vector<1x128xbf16>
    %c0_63 = arith.constant 0 : index
    %c0_64 = arith.constant 0 : index
    %227 = vector.load %arg5[%c0_63, %c0_64] : memref<128x384xbf16, #tpu.memory_space<vmem>>, vector<128x384xbf16>
    %cst_65 = arith.constant dense<0.000000e+00> : vector<1x384xf32>
    %228 = tpu.matmul %226, %227, %cst_65 {dimension_numbers = #tpu.dot_dimension_numbers<[1], [0], [0], [1], [0, 0, 1, 1], [], []>} : vector<1x128xbf16>, vector<128x384xbf16>, vector<1x384xf32> -> vector<1x384xf32>
    %c0_66 = arith.constant 0 : index
    %c0_67 = arith.constant 0 : index
    %229 = vector.load %arg7[%c0_66, %c0_67] : memref<1x384xf32, #tpu.memory_space<vmem>>, vector<1x384xf32>
    %230 = arith.addf %228, %229 : vector<1x384xf32>
    %231 = vector.extract_strided_slice %32 {offsets = [6, 0], sizes = [1, 384], strides = [1, 1]} : vector<8x384xf32> to vector<1x384xf32>
    %232 = vector.extract_strided_slice %231 {offsets = [0, 0], sizes = [1, 128], strides = [1, 1]} : vector<1x384xf32> to vector<1x128xf32>
    %233 = vector.extract_strided_slice %230 {offsets = [0, 0], sizes = [1, 128], strides = [1, 1]} : vector<1x384xf32> to vector<1x128xf32>
    %234 = arith.addf %232, %233 : vector<1x128xf32>
    %235 = arith.negf %234 : vector<1x128xf32>
    %236 = math.exp %235 : vector<1x128xf32>
    %cst_68 = arith.constant 1.000000e+00 : f32
    %237 = vector.broadcast %cst_68 : f32 to vector<1x128xf32>
    %238 = arith.addf %237, %236 : vector<1x128xf32>
    %239 = arith.divf %237, %238 : vector<1x128xf32>
    %240 = vector.extract_strided_slice %231 {offsets = [0, 128], sizes = [1, 128], strides = [1, 1]} : vector<1x384xf32> to vector<1x128xf32>
    %241 = vector.extract_strided_slice %230 {offsets = [0, 128], sizes = [1, 128], strides = [1, 1]} : vector<1x384xf32> to vector<1x128xf32>
    %242 = arith.addf %240, %241 : vector<1x128xf32>
    %243 = arith.negf %242 : vector<1x128xf32>
    %244 = math.exp %243 : vector<1x128xf32>
    %cst_69 = arith.constant 1.000000e+00 : f32
    %245 = vector.broadcast %cst_69 : f32 to vector<1x128xf32>
    %246 = arith.addf %245, %244 : vector<1x128xf32>
    %247 = arith.divf %245, %246 : vector<1x128xf32>
    %248 = vector.extract_strided_slice %231 {offsets = [0, 256], sizes = [1, 128], strides = [1, 1]} : vector<1x384xf32> to vector<1x128xf32>
    %249 = vector.extract_strided_slice %230 {offsets = [0, 256], sizes = [1, 128], strides = [1, 1]} : vector<1x384xf32> to vector<1x128xf32>
    %250 = arith.mulf %239, %249 : vector<1x128xf32>
    %251 = arith.addf %248, %250 : vector<1x128xf32>
    %252 = math.tanh %251 : vector<1x128xf32>
    %cst_70 = arith.constant 1.000000e+00 : f32
    %253 = vector.broadcast %cst_70 : f32 to vector<1x128xf32>
    %254 = arith.subf %253, %247 : vector<1x128xf32>
    %255 = arith.mulf %254, %252 : vector<1x128xf32>
    %256 = arith.mulf %247, %225 : vector<1x128xf32>
    %257 = arith.addf %255, %256 : vector<1x128xf32>
    %258 = arith.truncf %257 : vector<1x128xf32> to vector<1x128xbf16>
    %c0_71 = arith.constant 0 : index
    %c0_72 = arith.constant 0 : index
    %259 = vector.load %arg5[%c0_71, %c0_72] : memref<128x384xbf16, #tpu.memory_space<vmem>>, vector<128x384xbf16>
    %cst_73 = arith.constant dense<0.000000e+00> : vector<1x384xf32>
    %260 = tpu.matmul %258, %259, %cst_73 {dimension_numbers = #tpu.dot_dimension_numbers<[1], [0], [0], [1], [0, 0, 1, 1], [], []>} : vector<1x128xbf16>, vector<128x384xbf16>, vector<1x384xf32> -> vector<1x384xf32>
    %c0_74 = arith.constant 0 : index
    %c0_75 = arith.constant 0 : index
    %261 = vector.load %arg7[%c0_74, %c0_75] : memref<1x384xf32, #tpu.memory_space<vmem>>, vector<1x384xf32>
    %262 = arith.addf %260, %261 : vector<1x384xf32>
    %263 = vector.extract_strided_slice %32 {offsets = [7, 0], sizes = [1, 384], strides = [1, 1]} : vector<8x384xf32> to vector<1x384xf32>
    %264 = vector.extract_strided_slice %263 {offsets = [0, 0], sizes = [1, 128], strides = [1, 1]} : vector<1x384xf32> to vector<1x128xf32>
    %265 = vector.extract_strided_slice %262 {offsets = [0, 0], sizes = [1, 128], strides = [1, 1]} : vector<1x384xf32> to vector<1x128xf32>
    %266 = arith.addf %264, %265 : vector<1x128xf32>
    %267 = arith.negf %266 : vector<1x128xf32>
    %268 = math.exp %267 : vector<1x128xf32>
    %cst_76 = arith.constant 1.000000e+00 : f32
    %269 = vector.broadcast %cst_76 : f32 to vector<1x128xf32>
    %270 = arith.addf %269, %268 : vector<1x128xf32>
    %271 = arith.divf %269, %270 : vector<1x128xf32>
    %272 = vector.extract_strided_slice %263 {offsets = [0, 128], sizes = [1, 128], strides = [1, 1]} : vector<1x384xf32> to vector<1x128xf32>
    %273 = vector.extract_strided_slice %262 {offsets = [0, 128], sizes = [1, 128], strides = [1, 1]} : vector<1x384xf32> to vector<1x128xf32>
    %274 = arith.addf %272, %273 : vector<1x128xf32>
    %275 = arith.negf %274 : vector<1x128xf32>
    %276 = math.exp %275 : vector<1x128xf32>
    %cst_77 = arith.constant 1.000000e+00 : f32
    %277 = vector.broadcast %cst_77 : f32 to vector<1x128xf32>
    %278 = arith.addf %277, %276 : vector<1x128xf32>
    %279 = arith.divf %277, %278 : vector<1x128xf32>
    %280 = vector.extract_strided_slice %263 {offsets = [0, 256], sizes = [1, 128], strides = [1, 1]} : vector<1x384xf32> to vector<1x128xf32>
    %281 = vector.extract_strided_slice %262 {offsets = [0, 256], sizes = [1, 128], strides = [1, 1]} : vector<1x384xf32> to vector<1x128xf32>
    %282 = arith.mulf %271, %281 : vector<1x128xf32>
    %283 = arith.addf %280, %282 : vector<1x128xf32>
    %284 = math.tanh %283 : vector<1x128xf32>
    %cst_78 = arith.constant 1.000000e+00 : f32
    %285 = vector.broadcast %cst_78 : f32 to vector<1x128xf32>
    %286 = arith.subf %285, %279 : vector<1x128xf32>
    %287 = arith.mulf %286, %284 : vector<1x128xf32>
    %288 = arith.mulf %279, %257 : vector<1x128xf32>
    %289 = arith.addf %287, %288 : vector<1x128xf32>
    %290 = tpu.concatenate %65, %97, %129, %161, %193, %225, %257, %289 in 0 : vector<1x128xf32>, vector<1x128xf32>, vector<1x128xf32>, vector<1x128xf32>, vector<1x128xf32>, vector<1x128xf32>, vector<1x128xf32>, vector<1x128xf32> -> vector<8x128xf32>
    %291 = arith.truncf %290 : vector<8x128xf32> to vector<8x128xbf16>
    %c0_79 = arith.constant 0 : index
    %c0_80 = arith.constant 0 : index
    %292 = vector.load %arg8[%c0_79, %c0_80] : memref<128x128xbf16, #tpu.memory_space<vmem>>, vector<128x128xbf16>
    %cst_81 = arith.constant dense<0.000000e+00> : vector<8x128xf32>
    %293 = tpu.matmul %291, %292, %cst_81 {dimension_numbers = #tpu.dot_dimension_numbers<[1], [0], [0], [1], [0, 0, 1, 1], [], []>} : vector<8x128xbf16>, vector<128x128xbf16>, vector<8x128xf32> -> vector<8x128xf32>
    %c0_82 = arith.constant 0 : index
    %c0_83 = arith.constant 0 : index
    %294 = vector.load %arg9[%c0_82, %c0_83] : memref<1x128xf32, #tpu.memory_space<vmem>>, vector<1x128xf32>
    %295 = vector.broadcast %294 : vector<1x128xf32> to vector<8x128xf32>
    %296 = arith.addf %293, %295 : vector<8x128xf32>
    %cst_84 = arith.constant dense<0xFF800000> : vector<8xf32>
    %297 = vector.multi_reduction <maximumf>, %296, %cst_84 [1] : vector<8x128xf32> to vector<8xf32>
    %298 = vector.shape_cast %297 : vector<8xf32> to vector<8x1xf32>
    %299 = vector.broadcast %298 : vector<8x1xf32> to vector<8x128xf32>
    %300 = arith.subf %296, %299 : vector<8x128xf32>
    %301 = math.exp %300 : vector<8x128xf32>
    %cst_85 = arith.constant dense<0.000000e+00> : vector<8xf32>
    %302 = vector.multi_reduction <add>, %301, %cst_85 [1] : vector<8x128xf32> to vector<8xf32>
    %303 = vector.shape_cast %302 : vector<8xf32> to vector<8x1xf32>
    %304 = math.log %303 : vector<8x1xf32>
    %305 = arith.addf %304, %298 : vector<8x1xf32>
    %306 = vector.broadcast %305 : vector<8x1xf32> to vector<8x128xf32>
    %307 = arith.subf %296, %306 : vector<8x128xf32>
    %c0_86 = arith.constant 0 : index
    %c0_87 = arith.constant 0 : index
    %308 = vector.load %arg10[%c0_86, %c0_87] : memref<8x128xf32, #tpu.memory_space<vmem>>, vector<8x128xf32>
    tpu.vector_store %arg10[%c0_86, %c0_87], %307 {strides = array<i32>} : memref<8x128xf32, #tpu.memory_space<vmem>>, vector<8x128xf32>,
    %c0_88 = arith.constant 0 : index
    %c0_89 = arith.constant 0 : index
    %309 = vector.load %arg11[%c0_88, %c0_89] : memref<1x128xf32, #tpu.memory_space<vmem>>, vector<1x128xf32>
    tpu.vector_store %arg11[%c0_88, %c0_89], %289 {strides = array<i32>} : memref<1x128xf32, #tpu.memory_space<vmem>>, vector<1x128xf32>,
    return
  }
  func.func @transform_0(%arg0: i32, %arg1: memref<8xi32, #tpu.memory_space<smem>>) -> (i32, i32) {
    %c0_i32 = arith.constant 0 : i32
    %c0_i32_0 = arith.constant 0 : i32
    %c0_i32_1 = arith.constant 0 : i32
    return %c0_i32, %c0_i32_0 : i32, i32
  }
  func.func @transform_1(%arg0: i32, %arg1: memref<8xi32, #tpu.memory_space<smem>>) -> (i32, i32) {
    %c0_i32 = arith.constant 0 : i32
    %c0_i32_0 = arith.constant 0 : i32
    %c0_i32_1 = arith.constant 0 : i32
    return %c0_i32, %c0_i32_0 : i32, i32
  }
  func.func @transform_2(%arg0: i32, %arg1: memref<8xi32, #tpu.memory_space<smem>>) -> (i32, i32) {
    %c0_i32 = arith.constant 0 : i32
    %c0_i32_0 = arith.constant 0 : i32
    %c0_i32_1 = arith.constant 0 : i32
    return %c0_i32, %c0_i32_0 : i32, i32
  }
  func.func @transform_3(%arg0: i32, %arg1: memref<8xi32, #tpu.memory_space<smem>>) -> (i32, i32) {
    %c0_i32 = arith.constant 0 : i32
    %c0_i32_0 = arith.constant 0 : i32
    %c0_i32_1 = arith.constant 0 : i32
    return %c0_i32, %c0_i32_0 : i32, i32
  }
  func.func @transform_4(%arg0: i32, %arg1: memref<8xi32, #tpu.memory_space<smem>>) -> (i32, i32) {
    %c0_i32 = arith.constant 0 : i32
    %c0_i32_0 = arith.constant 0 : i32
    %c0_i32_1 = arith.constant 0 : i32
    return %c0_i32, %c0_i32_0 : i32, i32
  }
  func.func @transform_5(%arg0: i32, %arg1: memref<8xi32, #tpu.memory_space<smem>>) -> (i32, i32) {
    %c0_i32 = arith.constant 0 : i32
    %c0_i32_0 = arith.constant 0 : i32
    %c0_i32_1 = arith.constant 0 : i32
    return %c0_i32, %c0_i32_0 : i32, i32
  }
  func.func @transform_6(%arg0: i32, %arg1: memref<8xi32, #tpu.memory_space<smem>>) -> (i32, i32) {
    %c0_i32 = arith.constant 0 : i32
    %c0_i32_0 = arith.constant 0 : i32
    %c0_i32_1 = arith.constant 0 : i32
    return %c0_i32, %c0_i32_0 : i32, i32
  }
  func.func @transform_7(%arg0: i32, %arg1: memref<8xi32, #tpu.memory_space<smem>>) -> (i32, i32) {
    %c0_i32 = arith.constant 0 : i32
    %c0_i32_0 = arith.constant 0 : i32
    %c0_i32_1 = arith.constant 0 : i32
    return %c0_i32, %c0_i32_0 : i32, i32
  }
  func.func @transform_8(%arg0: i32, %arg1: memref<8xi32, #tpu.memory_space<smem>>) -> (i32, i32) {
    %c0_i32 = arith.constant 0 : i32
    %c0_i32_0 = arith.constant 0 : i32
    %c0_i32_1 = arith.constant 0 : i32
    return %c0_i32, %c0_i32_0 : i32, i32
  }
  func.func @transform_9(%arg0: i32, %arg1: memref<8xi32, #tpu.memory_space<smem>>) -> (i32, i32) {
    %c0_i32 = arith.constant 0 : i32
    %c0_i32_0 = arith.constant 0 : i32
    %c0_i32_1 = arith.constant 0 : i32
    return %c0_i32, %c0_i32_0 : i32, i32
  }
}

</mosaic_0001>

<bundles_post_ra>
// kernel: tpu_custom_call.1
= control target key start
LH: loop header
LB: loop body
LE: loop exit
PB: predicated region body
PF: predicated region fallthrough
CT: control target
= control target key end

     0   :  { %s2397_s13 = smov [#allocation3]   ;;  %s2994_s0 = inlined_call_operand.hbm [shape: s32[8], index: 0, kind: input, shape index: {}]   ;;  %s2995_s1 = inlined_call_operand.hbm [shape: f32[64,128], index: 1, kind: input, shape index: {}]   ;;  %s2996_s2 = inlined_call_operand.vmem [shape: f32[1,128], index: 2, kind: input, shape index: {}]   ;;  %s2997_s3 = inlined_call_operand.hbm [shape: bf16[128,384], index: 3, kind: input, shape index: {}]   ;;  %s2998_s4 = inlined_call_operand.hbm [shape: bf16[128,384], index: 4, kind: input, shape index: {}]   ;;  %s2999_s5 = inlined_call_operand.vmem [shape: f32[1,384], index: 5, kind: input, shape index: {}]   ;;  %s3000_s6 = inlined_call_operand.vmem [shape: f32[1,384], index: 6, kind: input, shape index: {}]   ;;  %s3001_s7 = inlined_call_operand.hbm [shape: bf16[128,128], index: 7, kind: input, shape index: {}]   ;;  %s3002_s8 = inlined_call_operand.vmem [shape: f32[1,128], index: 8, kind: input, shape index: {}]   ;;  %s3003_s9 = inlined_call_operand.hbm [shape: f32[8,128], index: 9, kind: output, shape index: {0}]   ;;  %s3004_s10 = inlined_call_operand.hbm [shape: f32[1,128], index: 10, kind: output, shape index: {1}]  }
   0x1   :  { %17 = dma.hbm_to_smem %s2994_s0, 16, %s2397_s13, [#allocation2] }
   0x2   :  { %2385 = dma.done.wait [#allocation2], 16 }
   0x3   :  { %2386 = vsyncadd [#allocation2], 4294967280 }
   0x4   :  { %19 = sfence }
   0x5   :  { %20 = vsyncpa [#allocation5], 0 }
   0x6   :  { %21 = vsyncpa [#allocation8], 0 }
   0x7   :  { %22 = vsyncpa [#allocation11], 0 }
   0x8   :  { %23 = vsyncpa [#allocation6], 0 }
   0x9   :  { %24 = vsyncpa [#allocation14], 0  ;;  %s2398_s16 = smov [#allocation7]  }
   0xa   :  { %s44_s17 = sshll.u32 %s2398_s16, 4  ;;  %s45_s17 = int_to_ptr.vmem [resolvable:$true] %s44_s17 }
   0xb   :  { %s2273_s18 = scalar_lea.vmem %s45_s17, 3072  ;;  %p2278_p1 = scmp.lt.s32.totalorder %s45_s17, %s45_s17 }
   0xc   :  { %p2274_p0 = scmp.ne.s32.totalorder %s45_s17, %s2273_s18  ;;  %p2279_p2 = scmp.lt.s32.totalorder %s2273_s18, %s2273_s18 }
   0xe   :  { %p2280_p3 = por %p2279_p2, %p2278_p1 }
  0x10   :  { %p2281_p4 = pnand %p2280_p3, %p2274_p0 }
  0x12   :  { %2284 = shalt.err (!%p2281_p4)
}
  0x13   :  { %s2399_s19 = smov 192   ;;  %s2400_s0 = smov 12  }
  0x14   :  { %50 = dma.hbm_to_vmem [thread:$0]  %s2997_s3, 3072, %s45_s17, [#allocation8], %s2399_s19, %s2399_s19, %s2400_s0  }
  0x15   :  { %s2401_s22 = smov [#allocation4]  }
  0x16   :  { %s30_s23 = sshll.u32 %s2401_s22, 4  ;;  %s31_s23 = int_to_ptr.vmem [resolvable:$true] %s30_s23 }
  0x17   :  { %s2293_s24 = scalar_lea.vmem %s31_s23, 1024  ;;  %p2298_p6 = scmp.lt.s32.totalorder %s31_s23, %s31_s23 }
  0x18   :  { %p2294_p5 = scmp.ne.s32.totalorder %s31_s23, %s2293_s24  ;;  %p2299_p7 = scmp.lt.s32.totalorder %s2293_s24, %s2293_s24 }
  0x1a   :  { %p2300_p8 = por %p2299_p7, %p2298_p6 }
  0x1c   :  { %p2301_p9 = pnand %p2300_p8, %p2294_p5 }
  0x1e   :  { %2304 = shalt.err (!%p2301_p9)
}
  0x1f   :  { %s2402_s25 = smov 128   ;;  %s2403_s26 = smov 8  }
  0x20   :  { %36 = dma.hbm_to_vmem [thread:$0]  %s2995_s1, 1024, %s31_s23, [#allocation5], %s2402_s25, %s2402_s25, %s2403_s26  }
  0x21   :  { %s2404_s29 = smov [#allocation9]   ;;  %s2405_s11 = smov [#allocation10]  }
  0x22   :  { %s56_s30 = sshll.u32 %s2404_s29, 4  ;;  %s72_s3 = sshll.u32 %s2405_s11, 4  ;;  %s57_s30 = int_to_ptr.vmem [resolvable:$true] %s56_s30  ;;  %s73_s3 = int_to_ptr.vmem [resolvable:$true] %s72_s3 }
  0x23   :  { %s2313_s12 = scalar_lea.vmem %s57_s30, 3072  ;;  %p2318_p11 = scmp.lt.s32.totalorder %s57_s30, %s57_s30 }
  0x24   :  { %p2314_p10 = scmp.ne.s32.totalorder %s57_s30, %s2313_s12  ;;  %p2319_p12 = scmp.lt.s32.totalorder %s2313_s12, %s2313_s12 }
  0x26   :  { %p2320_p13 = por %p2319_p12, %p2318_p11 }
  0x28   :  { %p2321_p0 = pnand %p2320_p13, %p2314_p10 }
  0x2a   :  { %2324 = shalt.err (!%p2321_p0)
}
  0x2b   :  { %62 = dma.hbm_to_vmem [thread:$0]  %s2998_s4, 3072, %s57_s30, [#allocation8], %s2399_s19, %s2399_s19, %s2400_s0  }
  0x2c   :  { %s2333_s1 = scalar_lea.vmem %s73_s3, 1024  ;;  %p2338_p2 = scmp.lt.s32.totalorder %s73_s3, %s73_s3 }
  0x2d   :  { %p2334_p1 = scmp.ne.s32.totalorder %s73_s3, %s2333_s1  ;;  %p2339_p3 = scmp.lt.s32.totalorder %s2333_s1, %s2333_s1 }
  0x2f   :  { %p2340_p4 = por %p2339_p3, %p2338_p2 }
  0x31   :  { %p2341_p5 = pnand %p2340_p4, %p2334_p1 }
  0x33   :  { %2344 = shalt.err (!%p2341_p5)
}
  0x34   :  { %s2406_s15 = smov 64   ;;  %s2407_s16 = smov 4  }
  0x35   :  { %78 = dma.hbm_to_vmem [thread:$0]  %s3001_s7, 1024, %s73_s3, [#allocation11], %s2406_s15, %s2406_s15, %s2407_s16  }
  0x36   :  { %2387 = dma.done.wait [#allocation5], 1024  }
  0x37   :  { %2388 = vsyncadd [#allocation5], 4294966272 }
  0x38   :  { %2389 = dma.done.wait [#allocation8], 6144  }
  0x39   :  { %2390 = vsyncadd [#allocation8], 4294961152 }
  0x3a   :  { %2391 = dma.done.wait [#allocation11], 1024  }
  0x3b   :  { %2392 = vsyncadd [#allocation11], 4294966272  ;;  %v2408_v0 = vmov 0.0   ;;  %v2409_v1 = vmov 0   ;;  %s2491_s4 = sld [smem:[#allocation3]]  ;;  %vm2410_vm0 = vmmov 0  }
  0x3c   :  { %1863 = vmatprep.subr.bf16.mxu1 %v2408_v0  ;;  %364 = vmatprep.mubr.bf16.mxu0 %v2409_v1  ;;  %s2495_s19 = sld [smem:[#allocation3 + $0x1]]  ;;  %v2079_v2 = vld [vmem:[#allocation7 + $0xac] ss:$12 sps:$4 sm:$0xff]   ;;  %v2081_v3 = vld [vmem:[#allocation7 + $0xa8] ss:$12 sps:$4 sm:$0xff]   ;;  %vm139_vm1 = vcmask 1040384  }
  0x3d   :  { %1879 = vmatprep.mubr.msk.bf16.mxu1 %vm2410_vm0, %v2408_v0  ;;  %s2497_s7 = sld [smem:[#allocation3 + $0x2]]  ;;  %332 = vmatprep.subr.bf16.mxu0 %v2079_v2  ;;  %v2082_v4 = vld [vmem:[#allocation7 + $0x94] ss:$12 sps:$4 sm:$0xff]   ;;  %v2084_v5 = vld [vmem:[#allocation7 + $0x90] ss:$12 sps:$4 sm:$0xff]   ;;  %vm141_vm2 = vcmask 1041408  }
  0x3e   :  { %s2499_s0 = sld [smem:[#allocation3 + $0x3]]  ;;  %333 = vmatpush1.bf16.msra.mxu0 %v2081_v3  ;;  %v2085_v6 = vld [vmem:[#allocation7 + $0x7c] ss:$12 sps:$4 sm:$0xff]   ;;  %v2087_v7 = vld [vmem:[#allocation7 + $0x78] ss:$12 sps:$4 sm:$0xff]   ;;  %vm143_vm3 = vcmask 1042432  }
  0x3f   :  { %s2501_s20 = sld [smem:[#allocation3 + $0x4]]  ;;  %334 = vmatprep.subr.bf16.mxu0 %v2082_v4  ;;  %v2088_v8 = vld [vmem:[#allocation7 + $0x64] ss:$12 sps:$4 sm:$0xff]   ;;  %v2090_v9 = vld [vmem:[#allocation7 + $0x60] ss:$12 sps:$4 sm:$0xff]   ;;  %vm145_vm4 = vcmask 1043456  }
  0x40   :  { %s2503_s21 = sld [smem:[#allocation3 + $0x5]]  ;;  %v2091_v10 = vld [vmem:[#allocation7 + $0x4c] ss:$12 sps:$4 sm:$0xff]   ;;  %v2103_v11 = vld [vmem:[#allocation7 + $0xb0] ss:$12 sps:$4 sm:$0xff]   ;;  %vm147_vm5 = vcmask 1044480  }
  0x41   :  { %s2505_s22 = sld [smem:[#allocation3 + $0x6]]  ;;  %s95_s24 = scalar_lea.vmem [#allocation4], %s2491_s4  ;;  %v2093_v16 = vld [vmem:[#allocation7 + $0x48] ss:$12 sps:$4 sm:$0xff]   ;;  %1864 = vmatpush3.bf16.msra.mxu1 %v2103_v11  ;;  %vm149_vm6 = vcmask 1045504   ;;  %vm151_vm7 = vcmask 1046528  }
  0x42   :  { %335 = vmatpush1.bf16.msra.mxu0 %v2084_v5  ;;  %s2507_s23 = sld [smem:[#allocation3 + $0x7]]  ;;  %v96_v12 = vld [vmem:[%s95_s24] sm:$0x1]  ;;  %s98_s25 = scalar_lea.vmem [#allocation4], %s2495_s19  ;;  %1865 = vmatprep.subr.bf16.mxu1 %v2408_v0  ;;  %v2106_v31 = vld [vmem:[#allocation7 + $0x98] ss:$12 sps:$4 sm:$0xff]  }
  0x43   :  { %336 = vmatprep.subr.bf16.mxu0 %v2085_v6  ;;  %v99_v13 = vld [vmem:[%s98_s25] sm:$0x1]  ;;  %s101_s26 = scalar_lea.vmem [#allocation4], %s2497_s7  ;;  %v2096_v32 = vld [vmem:[#allocation7 + $0x30] ss:$12 sps:$4 sm:$0xff]   ;;  %s2411_s15 = smov [#allocation13]  }
  0x44   :  { %v102_v14 = vld [vmem:[%s101_s26] sm:$0x1]  ;;  %s104_s27 = scalar_lea.vmem [#allocation4], %s2499_s0  ;;  %v119_v19 = vrot.slane %v99_v13, 7  ;;  %v2097_v37 = vld [vmem:[#allocation7 + $0x1c] ss:$12 sps:$4 sm:$0xff]  }
  0x45   :  { %v105_v15 = vld [vmem:[%s104_s27] sm:$0x1]  ;;  %s107_s28 = scalar_lea.vmem [#allocation4], %s2501_s20  ;;  %v122_v20 = vrot.slane %v102_v14, 6  ;;  %1866 = vmatpush3.bf16.msra.mxu1 %v2106_v31  ;;  %v2099_v39 = vld [vmem:[#allocation7 + $0x18] ss:$12 sps:$4 sm:$0xff]  }
  0x46   :  { %337 = vmatpush1.bf16.msra.mxu0 %v2087_v7  ;;  %v108_v17 = vld [vmem:[%s107_s28] sm:$0x1]  ;;  %s110_s29 = scalar_lea.vmem [#allocation4], %s2503_s21  ;;  %v125_v22 = vrot.slane %v105_v15, 5  ;;  %v140_v26 = vsel %vm139_vm1, %v96_v12, %v119_v19  ;;  %1867 = vmatprep.subr.bf16.mxu1 %v2408_v0  ;;  %v2114_v41 = vld [vmem:[#allocation7 + $0x68] ss:$12 sps:$4 sm:$0xff]  }
  0x47   :  { %338 = vmatprep.subr.bf16.mxu0 %v2088_v8  ;;  %v111_v18 = vld [vmem:[%s110_s29] sm:$0x1]  ;;  %v128_v23 = vrot.slane %v108_v17, 4  ;;  %s113_s30 = scalar_lea.vmem [#allocation4], %s2505_s22  ;;  %v142_v29 = vsel %vm141_vm2, %v140_v26, %v122_v20  ;;  %v2100_v42 = vld [vmem:[#allocation7 + $0x4] ss:$12 sps:$4 sm:$0xff]  }
  0x48   :  { %v2094_v21 = vld [vmem:[#allocation7 + $0x34] ss:$12 sps:$4 sm:$0xff]   ;;  %v131_v25 = vrot.slane %v111_v18, 3  ;;  %s116_s11 = scalar_lea.vmem [#allocation4], %s2507_s23  ;;  %v144_v30 = vsel %vm143_vm3, %v142_v29, %v125_v22  ;;  %v2118_v45 = vld [vmem:[#allocation7 + $0x50] ss:$12 sps:$4 sm:$0xff]  }
  0x49   :  { %v114_v24 = vld [vmem:[%s113_s30] sm:$0x1]  ;;  %v146_v33 = vsel %vm145_vm4, %v144_v30, %v128_v23  ;;  %v2527_v46 = vld [vmem:[#allocation9 + $0xac] ss:$12 sps:$4 sm:$0xff]   ;;  %v2530_v48 = vld [vmem:[#allocation9 + $0xa8] ss:$12 sps:$4 sm:$0xff]  }
  0x4a   :  { %339 = vmatpush1.bf16.msra.mxu0 %v2090_v9  ;;  %v117_v27 = vld [vmem:[%s116_s11] sm:$0x1]  ;;  %v134_v28 = vrot.slane %v114_v24, 2  ;;  %v148_v35 = vsel %vm147_vm5, %v146_v33, %v131_v25  ;;  %v2122_v49 = vld [vmem:[#allocation7 + $0x38] ss:$12 sps:$4 sm:$0xff]   ;;  %s1670_s16 = sshll.u32 %s2411_s15, 4  ;;  %s1671_s16 = int_to_ptr.vmem [resolvable:$true] %s1670_s16 }
  0x4b   :  { %340 = vmatprep.subr.bf16.mxu0 %v2091_v10  ;;  %v137_v34 = vrot.slane %v117_v27, 1  ;;  %v2110_v36 = vld [vmem:[#allocation7 + $0x80] ss:$12 sps:$4 sm:$0xff]   ;;  %v2536_v51 = vld [vmem:[#allocation9 + $0x90] ss:$12 sps:$4 sm:$0xff]   ;;  %s2345_s17 = scalar_lea.vmem %s1671_s16, 16  ;;  %p2350_p7 = scmp.lt.s32.totalorder %s1671_s16, %s1671_s16 }
  0x4c   :  { %v150_v38 = vsel %vm149_vm6, %v148_v35, %v134_v28  ;;  %1868 = vmatpush3.bf16.msra.mxu1 %v2110_v36  ;;  %v2102_v43 = vld [vmem:[#allocation7] ss:$12 sps:$4 sm:$0xff]   ;;  %v2540_v53 = vld [vmem:[#allocation9 + $0x7c] ss:$12 sps:$4 sm:$0xff]   ;;  %v2544_v54 = vld [vmem:[#allocation9 + $0x78] ss:$12 sps:$4 sm:$0xff]   ;;  %p2346_p6 = scmp.ne.s32.totalorder %s1671_s16, %s2345_s17 }
  0x4d   :  { %v152_v40 = vsel %vm151_vm7, %v150_v38, %v137_v34  ;;  %1869 = vmatprep.subr.bf16.mxu1 %v2408_v0  ;;  %v2533_v50 = vld [vmem:[#allocation9 + $0x94] ss:$12 sps:$4 sm:$0xff]   ;;  %v2548_v56 = vld [vmem:[#allocation9 + $0x64] ss:$12 sps:$4 sm:$0xff]   ;;  %v2555_v59 = vld [vmem:[#allocation9 + $0x4c] ss:$12 sps:$4 sm:$0xff]  }
  0x4e   :  { %341 = vmatpush1.bf16.msra.mxu0 %v2093_v16  ;;  %v153_v44 = vmax.f32 %v152_v40, 0.0  ;;  %v2126_v52 = vld [vmem:[#allocation7 + $0x20] ss:$12 sps:$4 sm:$0xff]   ;;  %v2130_v55 = vld [vmem:[#allocation7 + $0x8] ss:$12 sps:$4 sm:$0xff]   ;;  %s2349_s18 = scalar_lea.vmem %s1671_s16, 32 }
  0x4f   :  { %342 = vmatprep.subr.bf16.mxu0 %v2094_v21  ;;  %v2551_v57 = vld [vmem:[#allocation9 + $0x60] ss:$12 sps:$4 sm:$0xff]   ;;  %v2553_v58 = vld [vmem:[#allocation9 + $0xb0] ss:$12 sps:$4 sm:$0xff]   ;;  %v2561_v60 = vld [vmem:[#allocation9 + $0x48] ss:$12 sps:$4 sm:$0xff]   ;;  %v189_v21 = vlaneseq  ;;  %p2351_p8 = scmp.lt.s32.totalorder %s2349_s18, %s2345_s17 }
  0x50   :  { %1870 = vmatpush3.bf16.msra.mxu1 %v2114_v41  ;;  %v154_v47 = vpack.c.bf16 %v153_v44, %v153_v44  ;;  %v2564_v61 = vld [vmem:[#allocation9 + $0x98] ss:$12 sps:$4 sm:$0xff]   ;;  %v2567_v62 = vld [vmem:[#allocation9 + $0x34] ss:$12 sps:$4 sm:$0xff]   ;;  %v2573_v63 = vld [vmem:[#allocation9 + $0x30] ss:$12 sps:$4 sm:$0xff]  }
  0x51   :  { %1871 = vmatprep.subr.bf16.mxu1 %v2408_v0  ;;  %v2576_v2 = vld [vmem:[#allocation9 + $0x80] ss:$12 sps:$4 sm:$0xff]   ;;  %v2579_v3 = vld [vmem:[#allocation9 + $0x1c] ss:$12 sps:$4 sm:$0xff]   ;;  %v2583_v4 = vld [vmem:[#allocation9 + $0x18] ss:$12 sps:$4 sm:$0xff]   ;;  %p2352_p9 = por %p2351_p8, %p2350_p7 }
  0x52   :  { %343 = vmatpush1.bf16.msra.mxu0 %v2096_v32  ;;  %v2586_v5 = vld [vmem:[#allocation9 + $0x68] ss:$12 sps:$4 sm:$0xff]   ;;  %v2589_v6 = vld [vmem:[#allocation9 + $0x4] ss:$12 sps:$4 sm:$0xff]   ;;  %v2593_v7 = vld [vmem:[#allocation9] ss:$12 sps:$4 sm:$0xff]  }
  0x53   :  { %344 = vmatprep.subr.bf16.mxu0 %v2097_v37  ;;  %v2598_v8 = vld [vmem:[%s2996_s2] sm:$0x1]  ;;  %v2601_v9 = vld [vmem:[#allocation9 + $0x50] ss:$12 sps:$4 sm:$0xff]   ;;  %v2609_v11 = vld [vmem:[#allocation9 + $0x38] ss:$12 sps:$4 sm:$0xff]   ;;  %p2353_p10 = pnand %p2352_p9, %p2346_p6 }
  0x54   :  { %1872 = vmatpush3.bf16.msra.mxu1 %v2118_v45  ;;  %v414_v10 = vpack.c.bf16 %v2598_v8, %v2598_v8  ;;  %v2614_v12 = vld [vmem:[#allocation9 + $0x20] ss:$12 sps:$4 sm:$0xff]   ;;  %v2621_v13 = vld [vmem:[#allocation9 + $0x8] ss:$12 sps:$4 sm:$0xff]   ;;  %v190_v23 = vshrl.u32 %v189_v21, 7 }
  0x55   :  { %1873 = vmatprep.subr.bf16.mxu1 %v2408_v0  ;;  %v187_v25 = vld [vmem:[%s2999_s5] sm:$0x7] }
  0x56   :  { %345 = vmatpush1.bf16.msra.mxu0 %v2099_v39  ;;  %v191_v24 = vsub.s32 0, %v190_v23  ;;  %v447_v26 = vld [vmem:[%s3000_s6] sm:$0x7]  ;;  %v195_v29 = vsub.s32 1, %v190_v23 }
  0x57   :  { %346 = vmatprep.subr.bf16.mxu0 %v2100_v42 }
  0x58   :  { %1874 = vmatpush3.bf16.msra.mxu1 %v2122_v49  ;;  %v192_v27 = vrot.slane %v187_v25, %v191_v24  ;;  %v2664_v28 = vrot.slane %v447_v26, %v191_v24  ;;  %v2668_v32 = vrot.slane %v447_v26, %v195_v29  ;;  %v196_v35 = vrot.slane %v187_v25, %v195_v29 }
  0x59   :  { %1875 = vmatprep.subr.bf16.mxu1 %v2408_v0 }
  0x5a   :  { %347 = vmatpush1.bf16.msra.mxu0 %v2102_v43 }
  0x5b   :  { %592 = vmatprep.subr.bf16.mxu0 %v2527_v46 }
  0x5c   :  { %1876 = vmatpush3.bf16.msra.mxu1 %v2126_v52 }
  0x5d   :  { %365 = vmatmul.mubr.bf16.vlgmr.msra.gmra.mxu0 %v154_v47  ;;  %1877 = vmatprep.subr.bf16.mxu1 %v2408_v0 }
  0x5e   :  { %593 = vmatpush1.bf16.msra.mxu0 %v2530_v48  ;;  %624 = vmatprep.mubr.bf16.mxu0 %v2409_v1 }
  0x5f   :  { %594 = vmatprep.subr.bf16.mxu0 %v2533_v50 }
  0x60   :  { %1878 = vmatpush3.bf16.msra.mxu1 %v2130_v55 }
  0x61   :  { %1883 = vmatprep.subr.bf16.mxu1 %v2408_v0 }
  0x62   :  { %595 = vmatpush1.bf16.msra.mxu0 %v2536_v51 }
  0x63   :  { %596 = vmatprep.subr.bf16.mxu0 %v2540_v53  ;;  %1880 = vmatmul.mubr.bf16.vlgmr.msra.gmra.mxu1 %v154_v47 }
  0x64   :  { %1884 = vmatpush3.bf16.msra.mxu1 %v2553_v58  ;;  %1899 = vmatprep.mubr.msk.bf16.mxu1 %vm2410_vm0, %v2408_v0 }
  0x65   :  { %1885 = vmatprep.subr.bf16.mxu1 %v2408_v0 }
  0x66   :  { %597 = vmatpush1.bf16.msra.mxu0 %v2544_v54 }
  0x67   :  { %598 = vmatprep.subr.bf16.mxu0 %v2548_v56 }
  0x68   :  { %1886 = vmatpush3.bf16.msra.mxu1 %v2564_v61 }
  0x69   :  { %1887 = vmatprep.subr.bf16.mxu1 %v2408_v0 }
  0x6a   :  { %599 = vmatpush1.bf16.msra.mxu0 %v2551_v57 }
  0x6b   :  { %600 = vmatprep.subr.bf16.mxu0 %v2555_v59 }
  0x6c   :  { %1888 = vmatpush3.bf16.msra.mxu1 %v2576_v2 }
  0x6d   :  { %1889 = vmatprep.subr.bf16.mxu1 %v2408_v0 }
  0x6e   :  { %601 = vmatpush1.bf16.msra.mxu0 %v2561_v60 }
  0x6f   :  { %602 = vmatprep.subr.bf16.mxu0 %v2567_v62 }
  0x70   :  { %1890 = vmatpush3.bf16.msra.mxu1 %v2586_v5 }
  0x71   :  { %1891 = vmatprep.subr.bf16.mxu1 %v2408_v0 }
  0x72   :  { %603 = vmatpush1.bf16.msra.mxu0 %v2573_v63 }
  0x73   :  { %604 = vmatprep.subr.bf16.mxu0 %v2579_v3 }
  0x74   :  { %1892 = vmatpush3.bf16.msra.mxu1 %v2601_v9 }
  0x75   :  { %1893 = vmatprep.subr.bf16.mxu1 %v2408_v0 }
  0x76   :  { %605 = vmatpush1.bf16.msra.mxu0 %v2583_v4 }
  0x77   :  { %606 = vmatprep.subr.bf16.mxu0 %v2589_v6 }
  0x78   :  { %1894 = vmatpush3.bf16.msra.mxu1 %v2609_v11 }
  0x79   :  { %1895 = vmatprep.subr.bf16.mxu1 %v2408_v0 }
  0x7a   :  { %607 = vmatpush1.bf16.msra.mxu0 %v2593_v7 }
  0x7b   :  { %695 = vmatprep.subr.bf16.mxu0 %v2527_v46 }
  0x7c   :  { %1896 = vmatpush3.bf16.msra.mxu1 %v2614_v12 }
  0x7d   :  { %625 = vmatmul.mubr.bf16.vlgmr.msra.gmra.mxu0 %v414_v10  ;;  %1897 = vmatprep.subr.bf16.mxu1 %v2408_v0 }
  0x7e   :  { %696 = vmatpush1.bf16.msra.mxu0 %v2530_v48  ;;  %727 = vmatprep.mubr.bf16.mxu0 %v2409_v1 }
  0x7f   :  { %697 = vmatprep.subr.bf16.mxu0 %v2533_v50 }
  0x80   :  { %1898 = vmatpush3.bf16.msra.mxu1 %v2621_v13 }
  0x81   :  { %1903 = vmatprep.subr.bf16.mxu1 %v2408_v0 }
  0x82   :  { %698 = vmatpush1.bf16.msra.mxu0 %v2536_v51 }
  0x83   :  { %699 = vmatprep.subr.bf16.mxu0 %v2540_v53  ;;  %1900 = vmatmul.mubr.bf16.vlgmr.msra.gmra.mxu1 %v414_v10  ;;  %v199_v10 = vsub.s32 2, %v190_v23 }
  0x84   :  { %1904 = vmatpush3.bf16.msra.mxu1 %v2553_v58  ;;  %1919 = vmatprep.mubr.msk.bf16.mxu1 %vm2410_vm0, %v2408_v0 }
  0x85   :  { %1905 = vmatprep.subr.bf16.mxu1 %v2408_v0 }
  0x86   :  { %700 = vmatpush1.bf16.msra.mxu0 %v2544_v54 }
  0x87   :  { %701 = vmatprep.subr.bf16.mxu0 %v2548_v56 }
  0x88   :  { %1906 = vmatpush3.bf16.msra.mxu1 %v2564_v61 }
  0x89   :  { %1907 = vmatprep.subr.bf16.mxu1 %v2408_v0 }
  0x8a   :  { %702 = vmatpush1.bf16.msra.mxu0 %v2551_v57 }
  0x8b   :  { %703 = vmatprep.subr.bf16.mxu0 %v2555_v59 }
  0x8c   :  { %1908 = vmatpush3.bf16.msra.mxu1 %v2576_v2 }
  0x8d   :  { %1909 = vmatprep.subr.bf16.mxu1 %v2408_v0 }
  0x8e   :  { %704 = vmatpush1.bf16.msra.mxu0 %v2561_v60 }
  0x8f   :  { %705 = vmatprep.subr.bf16.mxu0 %v2567_v62 }
  0x90   :  { %1910 = vmatpush3.bf16.msra.mxu1 %v2586_v5 }
  0x91   :  { %1911 = vmatprep.subr.bf16.mxu1 %v2408_v0 }
  0x92   :  { %706 = vmatpush1.bf16.msra.mxu0 %v2573_v63 }
  0x93   :  { %707 = vmatprep.subr.bf16.mxu0 %v2579_v3 }
  0x94   :  { %1912 = vmatpush3.bf16.msra.mxu1 %v2601_v9 }
  0x95   :  { %1913 = vmatprep.subr.bf16.mxu1 %v2408_v0 }
  0x96   :  { %708 = vmatpush1.bf16.msra.mxu0 %v2583_v4 }
  0x97   :  { %709 = vmatprep.subr.bf16.mxu0 %v2589_v6 }
  0x98   :  { %1914 = vmatpush3.bf16.msra.mxu1 %v2609_v11 }
  0x99   :  { %1915 = vmatprep.subr.bf16.mxu1 %v2408_v0 }
  0x9a   :  { %710 = vmatpush1.bf16.msra.mxu0 %v2593_v7 }
  0x9b   :  { %814 = vmatprep.subr.bf16.mxu0 %v2527_v46 }
  0x9c   :  { %1916 = vmatpush3.bf16.msra.mxu1 %v2614_v12 }
  0x9d   :  { %1917 = vmatprep.subr.bf16.mxu1 %v2408_v0 }
  0xa0   :  { %1918 = vmatpush3.bf16.msra.mxu1 %v2621_v13 }
  0xa1   :  { %1923 = vmatprep.subr.bf16.mxu1 %v2408_v0 }
 0x11d   :  { %v366_v14 = vpop.f32.mrf.mxu0 }
 0x11e   :  { %v2666_v31 = vadd.f32 %v366_v14, %v192_v27  ;;  %v2676_v14 = vrot.slane %v447_v26, %v199_v10 }
 0x11f   :  { %v368_v15 = vpop.f32.mrf.mxu0 }
 0x120   :  { %v2673_v41 = vadd.f32 %v368_v15, %v196_v35 }
 0x121   :  { %v370_v16 = vpop.f32.mrf.mxu0 }
 0x123   :  { %v371_v17 = vpop.f32.mrf.mxu0  ;;  %v407_v18 = vpop.f32.mrf.mxu1 }
 0x124   :  { %v200_v17 = vrot.slane %v187_v25, %v199_v10 }
 0x125   :  { %v1881_v19 = vpop.f32.mrf.mxu1 }
 0x126   :  { %v2679_v21 = vadd.f32 %v407_v18, %v200_v17 }
 0x127   :  { %v410_v20 = vpop.f32.mrf.mxu1 }
 0x129   :  { %v1882_v22 = vpop.f32.mrf.mxu1 }
 0x13d   :  { %v626_v30 = vpop.f32.mrf.mxu0 }
 0x13e   :  { %v627_v33 = vadd.f32 %v626_v30, %v2664_v28 }
 0x13f   :  { %v628_v34 = vpop.f32.mrf.mxu0 }
 0x140   :  { %v673_v36 = vadd.f32 %v627_v33, %v2666_v31  ;;  %v629_v39 = vadd.f32 %v628_v34, %v2668_v32 }
 0x141   :  { %v630_v37 = vpop.f32.mrf.mxu0 }
 0x142   :  { %v1748_v38 = vmul.f32 -1.442695, %v673_v36  ;;  %v680_v42 = vadd.f32 %v629_v39, %v2673_v41 }
 0x143   :  { %v631_v40 = vpop.f32.mrf.mxu0  ;;  %v667_v43 = vpop.f32.mrf.mxu1 }
 0x144   :  { %2151 = vpow2.f32 %v1748_v38  ;;  %v1749_v44 = vmul.f32 -1.442695, %v680_v42  ;;  %v668_v15 = vadd.f32 %v667_v43, %v2676_v14 }
 0x145   :  { %v1901_v45 = vpop.f32.mrf.mxu1 }
 0x146   :  { %2153 = vpow2.f32 %v1749_v44 }
 0x147   :  { %v670_v47 = vpop.f32.mrf.mxu1 }
 0x149   :  { %v1902_v49 = vpop.f32.mrf.mxu1 }
 0x151   :  { %v2152_v52 = vpop.eup %2151 }
 0x152   :  { %v677_v55 = vadd.f32 1.0, %v2152_v52 }
 0x153   :  { %v2154_v16 = vpop.eup %2153 }
 0x154   :  { %2155 = vrcp.f32 %v677_v55  ;;  %v684_v19 = vadd.f32 1.0, %v2154_v16 }
 0x156   :  { %2157 = vrcp.f32 %v684_v19 }
 0x161   :  { %v2156_v20 = vpop.eup %2155 }
 0x162   :  { %v687_v22 = vmul.f32 %v2156_v20, %v668_v15 }
 0x163   :  { %v2158_v27 = vpop.eup %2157 }
 0x164   :  { %v688_v24 = vadd.f32 %v687_v22, %v2679_v21  ;;  %v690_v29 = vsub.f32 1.0, %v2158_v27  ;;  %v692_v23 = vmul.f32 %v2158_v27, %v2598_v8 }
 0x166   :  { %2159 = vtanh.f32 %v688_v24 }
 0x173   :  { %v2160_v30 = vpop.eup %2159 }
 0x174   :  { %v691_v33 = vmul.f32 %v2160_v30, %v690_v29 }
 0x176   :  { %v2683_v26 = vadd.f32 %v692_v23, %v691_v33 }
 0x178   :  { %v694_v25 = vpack.c.bf16 %v2683_v26, %v2683_v26  ;;  %v805_v30 = vrot.slane %v2683_v26, 7 }
 0x17a   :  { %728 = vmatmul.mubr.bf16.vlgmr.msra.gmra.mxu0 %v694_v25  ;;  %1920 = vmatmul.mubr.bf16.vlgmr.msra.gmra.mxu1 %v694_v25 }
 0x17b   :  { %815 = vmatpush1.bf16.msra.mxu0 %v2530_v48  ;;  %1924 = vmatpush3.bf16.msra.mxu1 %v2553_v58 }
 0x17c   :  { %816 = vmatprep.subr.bf16.mxu0 %v2533_v50  ;;  %1925 = vmatprep.subr.bf16.mxu1 %v2408_v0 }
 0x17d   :  { %846 = vmatprep.mubr.bf16.mxu0 %v2409_v1  ;;  %1939 = vmatprep.mubr.msk.bf16.mxu1 %vm2410_vm0, %v2408_v0 }
 0x17f   :  { %817 = vmatpush1.bf16.msra.mxu0 %v2536_v51  ;;  %1926 = vmatpush3.bf16.msra.mxu1 %v2564_v61 }
 0x180   :  { %818 = vmatprep.subr.bf16.mxu0 %v2540_v53  ;;  %1927 = vmatprep.subr.bf16.mxu1 %v2408_v0 }
 0x183   :  { %819 = vmatpush1.bf16.msra.mxu0 %v2544_v54  ;;  %1928 = vmatpush3.bf16.msra.mxu1 %v2576_v2 }
 0x184   :  { %820 = vmatprep.subr.bf16.mxu0 %v2548_v56  ;;  %1929 = vmatprep.subr.bf16.mxu1 %v2408_v0 }
 0x187   :  { %821 = vmatpush1.bf16.msra.mxu0 %v2551_v57  ;;  %1930 = vmatpush3.bf16.msra.mxu1 %v2586_v5 }
 0x188   :  { %822 = vmatprep.subr.bf16.mxu0 %v2555_v59  ;;  %1931 = vmatprep.subr.bf16.mxu1 %v2408_v0 }
 0x18b   :  { %823 = vmatpush1.bf16.msra.mxu0 %v2561_v60  ;;  %1932 = vmatpush3.bf16.msra.mxu1 %v2601_v9 }
 0x18c   :  { %824 = vmatprep.subr.bf16.mxu0 %v2567_v62  ;;  %1933 = vmatprep.subr.bf16.mxu1 %v2408_v0 }
 0x18f   :  { %825 = vmatpush1.bf16.msra.mxu0 %v2573_v63  ;;  %1934 = vmatpush3.bf16.msra.mxu1 %v2609_v11 }
 0x190   :  { %826 = vmatprep.subr.bf16.mxu0 %v2579_v3  ;;  %1935 = vmatprep.subr.bf16.mxu1 %v2408_v0 }
 0x193   :  { %827 = vmatpush1.bf16.msra.mxu0 %v2583_v4  ;;  %1936 = vmatpush3.bf16.msra.mxu1 %v2614_v12 }
 0x194   :  { %828 = vmatprep.subr.bf16.mxu0 %v2589_v6  ;;  %1937 = vmatprep.subr.bf16.mxu1 %v2408_v0 }
 0x197   :  { %829 = vmatpush1.bf16.msra.mxu0 %v2593_v7  ;;  %1938 = vmatpush3.bf16.msra.mxu1 %v2621_v13 }
 0x198   :  { %932 = vmatprep.subr.bf16.mxu0 %v2527_v46  ;;  %1943 = vmatprep.subr.bf16.mxu1 %v2408_v0 }
 0x23a   :  { %v729_v8 = vpop.f32.mrf.mxu0  ;;  %v770_v18 = vpop.f32.mrf.mxu1 }
 0x23b   :  { %v730_v34 = vadd.f32 %v729_v8, %v2664_v28  ;;  %v771_v17 = vadd.f32 %v770_v18, %v2676_v14 }
 0x23c   :  { %v731_v35 = vpop.f32.mrf.mxu0  ;;  %v1921_v36 = vpop.f32.mrf.mxu1 }
 0x23d   :  { %v777_v37 = vrot.slane %v730_v34, 7  ;;  %v732_v38 = vadd.f32 %v731_v35, %v2668_v32  ;;  %v797_v15 = vrot.slane %v771_v17, 7 }
 0x23e   :  { %v733_v39 = vpop.f32.mrf.mxu0  ;;  %v773_v40 = vpop.f32.mrf.mxu1 }
 0x23f   :  { %v779_v42 = vadd.f32 %v777_v37, %v2666_v31  ;;  %v787_v47 = vrot.slane %v732_v38, 7 }
 0x240   :  { %v734_v43 = vpop.f32.mrf.mxu0  ;;  %v1922_v44 = vpop.f32.mrf.mxu1 }
 0x241   :  { %v1750_v45 = vmul.f32 -1.442695, %v779_v42  ;;  %v789_v49 = vadd.f32 %v787_v47, %v2673_v41 }
 0x243   :  { %2161 = vpow2.f32 %v1750_v45  ;;  %v1751_v52 = vmul.f32 -1.442695, %v789_v49 }
 0x245   :  { %2163 = vpow2.f32 %v1751_v52 }
 0x250   :  { %v2162_v55 = vpop.eup %2161 }
 0x251   :  { %v783_v10 = vadd.f32 1.0, %v2162_v55 }
 0x252   :  { %v2164_v16 = vpop.eup %2163 }
 0x253   :  { %2165 = vrcp.f32 %v783_v10  ;;  %v793_v19 = vadd.f32 1.0, %v2164_v16 }
 0x255   :  { %2167 = vrcp.f32 %v793_v19 }
 0x260   :  { %v2166_v20 = vpop.eup %2165 }
 0x261   :  { %v799_v22 = vmul.f32 %v2166_v20, %v797_v15 }
 0x262   :  { %v2168_v27 = vpop.eup %2167 }
 0x263   :  { %v800_v24 = vadd.f32 %v799_v22, %v2679_v21  ;;  %v802_v29 = vsub.f32 1.0, %v2168_v27  ;;  %v807_v25 = vmul.f32 %v2168_v27, %v805_v30 }
 0x265   :  { %2169 = vtanh.f32 %v800_v24 }
 0x272   :  { %v2170_v33 = vpop.eup %2169 }
 0x273   :  { %v803_v23 = vmul.f32 %v2170_v33, %v802_v29 }
 0x275   :  { %v2729_v8 = vadd.f32 %v807_v25, %v803_v23 }
 0x277   :  { %v809_v18 = vpack.c.bf16 %v2729_v8, %v2729_v8  ;;  %v924_v25 = vrot.slane %v2729_v8, 7 }
 0x279   :  { %v811_v34 = vshrl.u32 %v809_v18, 16 }
 0x27b   :  { %847 = vmatmul.mubr.bf16.vlgmr.msra.gmra.mxu0 %v811_v34  ;;  %1940 = vmatmul.mubr.bf16.vlgmr.msra.gmra.mxu1 %v811_v34 }
 0x27c   :  { %933 = vmatpush1.bf16.msra.mxu0 %v2530_v48  ;;  %1944 = vmatpush3.bf16.msra.mxu1 %v2553_v58 }
 0x27d   :  { %934 = vmatprep.subr.bf16.mxu0 %v2533_v50  ;;  %1945 = vmatprep.subr.bf16.mxu1 %v2408_v0 }
 0x27e   :  { %964 = vmatprep.mubr.bf16.mxu0 %v2409_v1  ;;  %1959 = vmatprep.mubr.msk.bf16.mxu1 %vm2410_vm0, %v2408_v0 }
 0x280   :  { %935 = vmatpush1.bf16.msra.mxu0 %v2536_v51  ;;  %1946 = vmatpush3.bf16.msra.mxu1 %v2564_v61 }
 0x281   :  { %936 = vmatprep.subr.bf16.mxu0 %v2540_v53  ;;  %1947 = vmatprep.subr.bf16.mxu1 %v2408_v0 }
 0x284   :  { %937 = vmatpush1.bf16.msra.mxu0 %v2544_v54  ;;  %1948 = vmatpush3.bf16.msra.mxu1 %v2576_v2 }
 0x285   :  { %938 = vmatprep.subr.bf16.mxu0 %v2548_v56  ;;  %1949 = vmatprep.subr.bf16.mxu1 %v2408_v0 }
 0x288   :  { %939 = vmatpush1.bf16.msra.mxu0 %v2551_v57  ;;  %1950 = vmatpush3.bf16.msra.mxu1 %v2586_v5 }
 0x289   :  { %940 = vmatprep.subr.bf16.mxu0 %v2555_v59  ;;  %1951 = vmatprep.subr.bf16.mxu1 %v2408_v0 }
 0x28c   :  { %941 = vmatpush1.bf16.msra.mxu0 %v2561_v60  ;;  %1952 = vmatpush3.bf16.msra.mxu1 %v2601_v9 }
 0x28d   :  { %942 = vmatprep.subr.bf16.mxu0 %v2567_v62  ;;  %1953 = vmatprep.subr.bf16.mxu1 %v2408_v0 }
 0x290   :  { %943 = vmatpush1.bf16.msra.mxu0 %v2573_v63  ;;  %1954 = vmatpush3.bf16.msra.mxu1 %v2609_v11 }
 0x291   :  { %944 = vmatprep.subr.bf16.mxu0 %v2579_v3  ;;  %1955 = vmatprep.subr.bf16.mxu1 %v2408_v0 }
 0x294   :  { %945 = vmatpush1.bf16.msra.mxu0 %v2583_v4  ;;  %1956 = vmatpush3.bf16.msra.mxu1 %v2614_v12 }
 0x295   :  { %946 = vmatprep.subr.bf16.mxu0 %v2589_v6  ;;  %1957 = vmatprep.subr.bf16.mxu1 %v2408_v0 }
 0x298   :  { %947 = vmatpush1.bf16.msra.mxu0 %v2593_v7  ;;  %1958 = vmatpush3.bf16.msra.mxu1 %v2621_v13 }
 0x299   :  { %1052 = vmatprep.subr.bf16.mxu0 %v2527_v46  ;;  %1963 = vmatprep.subr.bf16.mxu1 %v2408_v0 }
 0x33b   :  { %v848_v35 = vpop.f32.mrf.mxu0  ;;  %v889_v36 = vpop.f32.mrf.mxu1 }
 0x33c   :  { %v849_v37 = vadd.f32 %v848_v35, %v2664_v28  ;;  %v890_v20 = vadd.f32 %v889_v36, %v2676_v14  ;;  %v1522_v36 = vsel %vm139_vm1, %v2683_v26, %v2729_v8 }
 0x33d   :  { %v850_v38 = vpop.f32.mrf.mxu0  ;;  %v1941_v39 = vpop.f32.mrf.mxu1 }
 0x33e   :  { %v896_v40 = vrot.slane %v849_v37, 6  ;;  %v851_v42 = vadd.f32 %v850_v38, %v2668_v32  ;;  %v916_v24 = vrot.slane %v890_v20, 6 }
 0x33f   :  { %v852_v43 = vpop.f32.mrf.mxu0  ;;  %v892_v44 = vpop.f32.mrf.mxu1 }
 0x340   :  { %v898_v45 = vadd.f32 %v896_v40, %v2666_v31  ;;  %v906_v55 = vrot.slane %v851_v42, 6 }
 0x341   :  { %v853_v47 = vpop.f32.mrf.mxu0  ;;  %v1942_v49 = vpop.f32.mrf.mxu1 }
 0x342   :  { %v1752_v52 = vmul.f32 -1.442695, %v898_v45  ;;  %v908_v10 = vadd.f32 %v906_v55, %v2673_v41 }
 0x344   :  { %2171 = vpow2.f32 %v1752_v52  ;;  %v1753_v16 = vmul.f32 -1.442695, %v908_v10 }
 0x346   :  { %2173 = vpow2.f32 %v1753_v16 }
 0x351   :  { %v2172_v17 = vpop.eup %2171 }
 0x352   :  { %v902_v19 = vadd.f32 1.0, %v2172_v17 }
 0x353   :  { %v2174_v15 = vpop.eup %2173 }
 0x354   :  { %2175 = vrcp.f32 %v902_v19  ;;  %v912_v22 = vadd.f32 1.0, %v2174_v15 }
 0x356   :  { %2177 = vrcp.f32 %v912_v22 }
 0x361   :  { %v2176_v27 = vpop.eup %2175 }
 0x362   :  { %v918_v29 = vmul.f32 %v2176_v27, %v916_v24 }
 0x363   :  { %v2178_v33 = vpop.eup %2177 }
 0x364   :  { %v919_v30 = vadd.f32 %v918_v29, %v2679_v21  ;;  %v921_v23 = vsub.f32 1.0, %v2178_v33  ;;  %v926_v35 = vmul.f32 %v2178_v33, %v924_v25 }
 0x366   :  { %2179 = vtanh.f32 %v919_v30 }
 0x373   :  { %v2180_v18 = vpop.eup %2179 }
 0x374   :  { %v922_v34 = vmul.f32 %v2180_v18, %v921_v23 }
 0x376   :  { %v2775_v37 = vadd.f32 %v926_v35, %v922_v34 }
 0x378   :  { %v928_v38 = vpack.c.bf16 %v2775_v37, %v2775_v37  ;;  %v2784_v39 = vsel %vm141_vm2, %v1522_v36, %v2775_v37  ;;  %v1042_v36 = vrot.slane %v2775_v37, 7 }
 0x37a   :  { %v930_v40 = vrot.slane %v928_v38, 1 }
 0x37c   :  { %965 = vmatmul.mubr.bf16.vlgmr.msra.gmra.mxu0 %v930_v40  ;;  %1960 = vmatmul.mubr.bf16.vlgmr.msra.gmra.mxu1 %v930_v40 }
 0x37d   :  { %1053 = vmatpush1.bf16.msra.mxu0 %v2530_v48  ;;  %1964 = vmatpush3.bf16.msra.mxu1 %v2553_v58 }
 0x37e   :  { %1054 = vmatprep.subr.bf16.mxu0 %v2533_v50  ;;  %1965 = vmatprep.subr.bf16.mxu1 %v2408_v0 }
 0x37f   :  { %1084 = vmatprep.mubr.bf16.mxu0 %v2409_v1  ;;  %1979 = vmatprep.mubr.msk.bf16.mxu1 %vm2410_vm0, %v2408_v0 }
 0x381   :  { %1055 = vmatpush1.bf16.msra.mxu0 %v2536_v51  ;;  %1966 = vmatpush3.bf16.msra.mxu1 %v2564_v61 }
 0x382   :  { %1056 = vmatprep.subr.bf16.mxu0 %v2540_v53  ;;  %1967 = vmatprep.subr.bf16.mxu1 %v2408_v0 }
 0x385   :  { %1057 = vmatpush1.bf16.msra.mxu0 %v2544_v54  ;;  %1968 = vmatpush3.bf16.msra.mxu1 %v2576_v2 }
 0x386   :  { %1058 = vmatprep.subr.bf16.mxu0 %v2548_v56  ;;  %1969 = vmatprep.subr.bf16.mxu1 %v2408_v0 }
 0x389   :  { %1059 = vmatpush1.bf16.msra.mxu0 %v2551_v57  ;;  %1970 = vmatpush3.bf16.msra.mxu1 %v2586_v5 }
 0x38a   :  { %1060 = vmatprep.subr.bf16.mxu0 %v2555_v59  ;;  %1971 = vmatprep.subr.bf16.mxu1 %v2408_v0 }
 0x38d   :  { %1061 = vmatpush1.bf16.msra.mxu0 %v2561_v60  ;;  %1972 = vmatpush3.bf16.msra.mxu1 %v2601_v9 }
 0x38e   :  { %1062 = vmatprep.subr.bf16.mxu0 %v2567_v62  ;;  %1973 = vmatprep.subr.bf16.mxu1 %v2408_v0 }
 0x391   :  { %1063 = vmatpush1.bf16.msra.mxu0 %v2573_v63  ;;  %1974 = vmatpush3.bf16.msra.mxu1 %v2609_v11 }
 0x392   :  { %1064 = vmatprep.subr.bf16.mxu0 %v2579_v3  ;;  %1975 = vmatprep.subr.bf16.mxu1 %v2408_v0 }
 0x395   :  { %1065 = vmatpush1.bf16.msra.mxu0 %v2583_v4  ;;  %1976 = vmatpush3.bf16.msra.mxu1 %v2614_v12 }
 0x396   :  { %1066 = vmatprep.subr.bf16.mxu0 %v2589_v6  ;;  %1977 = vmatprep.subr.bf16.mxu1 %v2408_v0 }
 0x399   :  { %1067 = vmatpush1.bf16.msra.mxu0 %v2593_v7  ;;  %1978 = vmatpush3.bf16.msra.mxu1 %v2621_v13 }
 0x39a   :  { %1170 = vmatprep.subr.bf16.mxu0 %v2527_v46  ;;  %1983 = vmatprep.subr.bf16.mxu1 %v2408_v0 }
 0x43c   :  { %v966_v26 = vpop.f32.mrf.mxu0  ;;  %v1007_v8 = vpop.f32.mrf.mxu1 }
 0x43d   :  { %v967_v42 = vadd.f32 %v966_v26, %v2664_v28  ;;  %v1008_v29 = vadd.f32 %v1007_v8, %v2676_v14 }
 0x43e   :  { %v968_v43 = vpop.f32.mrf.mxu0  ;;  %v1961_v44 = vpop.f32.mrf.mxu1 }
 0x43f   :  { %v1014_v45 = vrot.slane %v967_v42, 5  ;;  %v969_v47 = vadd.f32 %v968_v43, %v2668_v32  ;;  %v1034_v33 = vrot.slane %v1008_v29, 5 }
 0x440   :  { %v970_v49 = vpop.f32.mrf.mxu0  ;;  %v1010_v52 = vpop.f32.mrf.mxu1 }
 0x441   :  { %v1016_v55 = vadd.f32 %v1014_v45, %v2666_v31  ;;  %v1024_v19 = vrot.slane %v969_v47, 5 }
 0x442   :  { %v971_v10 = vpop.f32.mrf.mxu0  ;;  %v1962_v16 = vpop.f32.mrf.mxu1 }
 0x443   :  { %v1754_v17 = vmul.f32 -1.442695, %v1016_v55  ;;  %v1026_v15 = vadd.f32 %v1024_v19, %v2673_v41 }
 0x445   :  { %2181 = vpow2.f32 %v1754_v17  ;;  %v1755_v20 = vmul.f32 -1.442695, %v1026_v15 }
 0x447   :  { %2183 = vpow2.f32 %v1755_v20 }
 0x452   :  { %v2182_v22 = vpop.eup %2181 }
 0x453   :  { %v1020_v24 = vadd.f32 1.0, %v2182_v22 }
 0x454   :  { %v2184_v27 = vpop.eup %2183 }
 0x455   :  { %2185 = vrcp.f32 %v1020_v24  ;;  %v1030_v30 = vadd.f32 1.0, %v2184_v27 }
 0x457   :  { %2187 = vrcp.f32 %v1030_v30 }
 0x462   :  { %v2186_v23 = vpop.eup %2185 }
 0x463   :  { %v1036_v25 = vmul.f32 %v2186_v23, %v1034_v33 }
 0x464   :  { %v2188_v34 = vpop.eup %2187 }
 0x465   :  { %v1037_v18 = vadd.f32 %v1036_v25, %v2679_v21  ;;  %v1039_v35 = vsub.f32 1.0, %v2188_v34  ;;  %v1044_v26 = vmul.f32 %v2188_v34, %v1042_v36 }
 0x467   :  { %2189 = vtanh.f32 %v1037_v18 }
 0x474   :  { %v2190_v38 = vpop.eup %2189 }
 0x475   :  { %v1040_v40 = vmul.f32 %v2190_v38, %v1039_v35 }
 0x477   :  { %v2828_v42 = vadd.f32 %v1044_v26, %v1040_v40 }
 0x479   :  { %v1046_v8 = vpack.c.bf16 %v2828_v42, %v2828_v42  ;;  %v2835_v43 = vsel %vm143_vm3, %v2784_v39, %v2828_v42  ;;  %v1162_v26 = vrot.slane %v2828_v42, 7 }
 0x47b   :  { %v1048_v44 = vshrl.u32 %v1046_v8, 16 }
 0x47d   :  { %v1050_v45 = vrot.slane %v1048_v44, 1 }
 0x47f   :  { %1085 = vmatmul.mubr.bf16.vlgmr.msra.gmra.mxu0 %v1050_v45  ;;  %1980 = vmatmul.mubr.bf16.vlgmr.msra.gmra.mxu1 %v1050_v45 }
 0x480   :  { %1171 = vmatpush1.bf16.msra.mxu0 %v2530_v48  ;;  %1984 = vmatpush3.bf16.msra.mxu1 %v2553_v58 }
 0x481   :  { %1172 = vmatprep.subr.bf16.mxu0 %v2533_v50  ;;  %1985 = vmatprep.subr.bf16.mxu1 %v2408_v0 }
 0x482   :  { %1202 = vmatprep.mubr.bf16.mxu0 %v2409_v1  ;;  %1999 = vmatprep.mubr.msk.bf16.mxu1 %vm2410_vm0, %v2408_v0 }
 0x484   :  { %1173 = vmatpush1.bf16.msra.mxu0 %v2536_v51  ;;  %1986 = vmatpush3.bf16.msra.mxu1 %v2564_v61 }
 0x485   :  { %1174 = vmatprep.subr.bf16.mxu0 %v2540_v53  ;;  %1987 = vmatprep.subr.bf16.mxu1 %v2408_v0 }
 0x488   :  { %1175 = vmatpush1.bf16.msra.mxu0 %v2544_v54  ;;  %1988 = vmatpush3.bf16.msra.mxu1 %v2576_v2 }
 0x489   :  { %1176 = vmatprep.subr.bf16.mxu0 %v2548_v56  ;;  %1989 = vmatprep.subr.bf16.mxu1 %v2408_v0 }
 0x48c   :  { %1177 = vmatpush1.bf16.msra.mxu0 %v2551_v57  ;;  %1990 = vmatpush3.bf16.msra.mxu1 %v2586_v5 }
 0x48d   :  { %1178 = vmatprep.subr.bf16.mxu0 %v2555_v59  ;;  %1991 = vmatprep.subr.bf16.mxu1 %v2408_v0 }
 0x490   :  { %1179 = vmatpush1.bf16.msra.mxu0 %v2561_v60  ;;  %1992 = vmatpush3.bf16.msra.mxu1 %v2601_v9 }
 0x491   :  { %1180 = vmatprep.subr.bf16.mxu0 %v2567_v62  ;;  %1993 = vmatprep.subr.bf16.mxu1 %v2408_v0 }
 0x494   :  { %1181 = vmatpush1.bf16.msra.mxu0 %v2573_v63  ;;  %1994 = vmatpush3.bf16.msra.mxu1 %v2609_v11 }
 0x495   :  { %1182 = vmatprep.subr.bf16.mxu0 %v2579_v3  ;;  %1995 = vmatprep.subr.bf16.mxu1 %v2408_v0 }
 0x498   :  { %1183 = vmatpush1.bf16.msra.mxu0 %v2583_v4  ;;  %1996 = vmatpush3.bf16.msra.mxu1 %v2614_v12 }
 0x499   :  { %1184 = vmatprep.subr.bf16.mxu0 %v2589_v6  ;;  %1997 = vmatprep.subr.bf16.mxu1 %v2408_v0 }
 0x49c   :  { %1185 = vmatpush1.bf16.msra.mxu0 %v2593_v7  ;;  %1998 = vmatpush3.bf16.msra.mxu1 %v2621_v13 }
 0x49d   :  { %1290 = vmatprep.subr.bf16.mxu0 %v2527_v46  ;;  %2003 = vmatprep.subr.bf16.mxu1 %v2408_v0 }
 0x53f   :  { %v1086_v37 = vpop.f32.mrf.mxu0  ;;  %v1127_v39 = vpop.f32.mrf.mxu1 }
 0x540   :  { %v1087_v47 = vadd.f32 %v1086_v37, %v2664_v28  ;;  %v1128_v23 = vadd.f32 %v1127_v39, %v2676_v14 }
 0x541   :  { %v1088_v49 = vpop.f32.mrf.mxu0  ;;  %v1981_v52 = vpop.f32.mrf.mxu1 }
 0x542   :  { %v1134_v55 = vrot.slane %v1087_v47, 4  ;;  %v1089_v10 = vadd.f32 %v1088_v49, %v2668_v32  ;;  %v1154_v18 = vrot.slane %v1128_v23, 4  ;;  %v2237_v23 = vld [vmem:[#allocation9 + $0xb0] ss:$12 sps:$4 sm:$0xff]  }
 0x543   :  { %v1090_v16 = vpop.f32.mrf.mxu0  ;;  %v1130_v17 = vpop.f32.mrf.mxu1 }
 0x544   :  { %v1136_v19 = vadd.f32 %v1134_v55, %v2666_v31  ;;  %v1144_v24 = vrot.slane %v1089_v10, 4 }
 0x545   :  { %v1091_v15 = vpop.f32.mrf.mxu0  ;;  %v1982_v20 = vpop.f32.mrf.mxu1 }
 0x546   :  { %v1756_v22 = vmul.f32 -1.442695, %v1136_v19  ;;  %v1146_v46 = vadd.f32 %v1144_v24, %v2673_v41 }
 0x548   :  { %2191 = vpow2.f32 %v1756_v22  ;;  %v1757_v27 = vmul.f32 -1.442695, %v1146_v46 }
 0x54a   :  { %2193 = vpow2.f32 %v1757_v27 }
 0x555   :  { %v2192_v29 = vpop.eup %2191 }
 0x556   :  { %v1140_v30 = vadd.f32 1.0, %v2192_v29 }
 0x557   :  { %v2194_v33 = vpop.eup %2193 }
 0x558   :  { %2195 = vrcp.f32 %v1140_v30  ;;  %v1150_v25 = vadd.f32 1.0, %v2194_v33  ;;  %v2236_v33 = vld [vmem:[#allocation9 + $0xa8] ss:$12 sps:$4 sm:$0xff]  }
 0x55a   :  { %2197 = vrcp.f32 %v1150_v25  ;;  %v2238_v25 = vld [vmem:[#allocation9 + $0x94] ss:$12 sps:$4 sm:$0xff]  }
 0x565   :  { %v2196_v34 = vpop.eup %2195 }
 0x566   :  { %v1156_v35 = vmul.f32 %v2196_v34, %v1154_v18  ;;  %v2239_v18 = vld [vmem:[#allocation9 + $0x90] ss:$12 sps:$4 sm:$0xff]   ;;  %v2240_v34 = vld [vmem:[#allocation9 + $0x98] ss:$12 sps:$4 sm:$0xff]  }
 0x567   :  { %v2198_v38 = vpop.eup %2197 }
 0x568   :  { %v1157_v36 = vadd.f32 %v1156_v35, %v2679_v21  ;;  %v1159_v40 = vsub.f32 1.0, %v2198_v38  ;;  %v1164_v45 = vmul.f32 %v2198_v38, %v1162_v26  ;;  %v2241_v35 = vld [vmem:[#allocation9 + $0x7c] ss:$12 sps:$4 sm:$0xff]   ;;  %v2243_v38 = vld [vmem:[#allocation9 + $0x80] ss:$12 sps:$4 sm:$0xff]  }
 0x569   :  { %v2246_v26 = vld [vmem:[#allocation9 + $0x68] ss:$12 sps:$4 sm:$0xff]  }
 0x56a   :  { %2199 = vtanh.f32 %v1157_v36  ;;  %v2242_v36 = vld [vmem:[#allocation9 + $0x78] ss:$12 sps:$4 sm:$0xff]  }
 0x577   :  { %v2200_v8 = vpop.eup %2199 }
 0x578   :  { %v1160_v44 = vmul.f32 %v2200_v8, %v1159_v40  ;;  %v2244_v40 = vld [vmem:[#allocation9 + $0x64] ss:$12 sps:$4 sm:$0xff]   ;;  %v2247_v8 = vld [vmem:[#allocation9 + $0x4c] ss:$12 sps:$4 sm:$0xff]  }
 0x57a   :  { %v2879_v37 = vadd.f32 %v1164_v45, %v1160_v44  ;;  %v2248_v44 = vld [vmem:[#allocation9 + $0x48] ss:$12 sps:$4 sm:$0xff]   ;;  %v2249_v45 = vld [vmem:[#allocation9 + $0x50] ss:$12 sps:$4 sm:$0xff]  }
 0x57c   :  { %v1166_v39 = vpack.c.bf16 %v2879_v37, %v2879_v37  ;;  %v2886_v47 = vsel %vm145_vm4, %v2835_v43, %v2879_v37  ;;  %v1280_v19 = vrot.slane %v2879_v37, 7  ;;  %v2250_v37 = vld [vmem:[#allocation9 + $0x34] ss:$12 sps:$4 sm:$0xff]  }
 0x57e   :  { %v1168_v49 = vrot.slane %v1166_v39, 2  ;;  %v2251_v39 = vld [vmem:[#allocation9 + $0x30] ss:$12 sps:$4 sm:$0xff]  }
 0x580   :  { %1203 = vmatmul.mubr.bf16.vlgmr.msra.gmra.mxu0 %v1168_v49  ;;  %2000 = vmatmul.mubr.bf16.vlgmr.msra.gmra.mxu1 %v1168_v49  ;;  %v2253_v49 = vld [vmem:[#allocation9 + $0x1c] ss:$12 sps:$4 sm:$0xff]  }
 0x581   :  { %1291 = vmatpush1.bf16.msra.mxu0 %v2530_v48  ;;  %2004 = vmatpush3.bf16.msra.mxu1 %v2553_v58  ;;  %v2235_v48 = vld [vmem:[#allocation9 + $0xac] ss:$12 sps:$4 sm:$0xff]  }
 0x582   :  { %1292 = vmatprep.subr.bf16.mxu0 %v2533_v50  ;;  %2005 = vmatprep.subr.bf16.mxu1 %v2408_v0 }
 0x583   :  { %1322 = vmatprep.mubr.bf16.mxu0 %v2409_v1  ;;  %2019 = vmatprep.mubr.msk.bf16.mxu1 %vm2410_vm0, %v2408_v0 }
 0x585   :  { %1293 = vmatpush1.bf16.msra.mxu0 %v2536_v51  ;;  %2006 = vmatpush3.bf16.msra.mxu1 %v2564_v61 }
 0x586   :  { %1294 = vmatprep.subr.bf16.mxu0 %v2540_v53  ;;  %2007 = vmatprep.subr.bf16.mxu1 %v2408_v0 }
 0x589   :  { %1295 = vmatpush1.bf16.msra.mxu0 %v2544_v54  ;;  %2008 = vmatpush3.bf16.msra.mxu1 %v2576_v2 }
 0x58a   :  { %1296 = vmatprep.subr.bf16.mxu0 %v2548_v56  ;;  %2009 = vmatprep.subr.bf16.mxu1 %v2408_v0 }
 0x58d   :  { %1297 = vmatpush1.bf16.msra.mxu0 %v2551_v57  ;;  %2010 = vmatpush3.bf16.msra.mxu1 %v2586_v5 }
 0x58e   :  { %1298 = vmatprep.subr.bf16.mxu0 %v2555_v59  ;;  %2011 = vmatprep.subr.bf16.mxu1 %v2408_v0 }
 0x591   :  { %1299 = vmatpush1.bf16.msra.mxu0 %v2561_v60  ;;  %2012 = vmatpush3.bf16.msra.mxu1 %v2601_v9 }
 0x592   :  { %1300 = vmatprep.subr.bf16.mxu0 %v2567_v62  ;;  %2013 = vmatprep.subr.bf16.mxu1 %v2408_v0 }
 0x595   :  { %1301 = vmatpush1.bf16.msra.mxu0 %v2573_v63  ;;  %2014 = vmatpush3.bf16.msra.mxu1 %v2609_v11 }
 0x596   :  { %1302 = vmatprep.subr.bf16.mxu0 %v2579_v3  ;;  %2015 = vmatprep.subr.bf16.mxu1 %v2408_v0 }
 0x599   :  { %1303 = vmatpush1.bf16.msra.mxu0 %v2583_v4  ;;  %2016 = vmatpush3.bf16.msra.mxu1 %v2614_v12 }
 0x59a   :  { %1304 = vmatprep.subr.bf16.mxu0 %v2589_v6  ;;  %2017 = vmatprep.subr.bf16.mxu1 %v2408_v0 }
 0x59d   :  { %1305 = vmatpush1.bf16.msra.mxu0 %v2593_v7  ;;  %2018 = vmatpush3.bf16.msra.mxu1 %v2621_v13 }
 0x59e   :  { %1408 = vmatprep.subr.bf16.mxu0 %v2235_v48  ;;  %2023 = vmatprep.subr.bf16.mxu1 %v2408_v0  ;;  %v2254_v48 = vld [vmem:[#allocation9 + $0x18] ss:$12 sps:$4 sm:$0xff]  }
 0x640   :  { %v1204_v50 = vpop.f32.mrf.mxu0  ;;  %v1245_v51 = vpop.f32.mrf.mxu1 }
 0x641   :  { %v1205_v53 = vadd.f32 %v1204_v50, %v2664_v28  ;;  %v1246_v11 = vadd.f32 %v1245_v51, %v2676_v14  ;;  %v2255_v50 = vld [vmem:[#allocation9 + $0x4] ss:$12 sps:$4 sm:$0xff]   ;;  %v2256_v51 = vld [vmem:[#allocation9] ss:$12 sps:$4 sm:$0xff]  }
 0x642   :  { %v1206_v54 = vpop.f32.mrf.mxu0  ;;  %v2001_v56 = vpop.f32.mrf.mxu1 }
 0x643   :  { %v1252_v57 = vrot.slane %v1205_v53, 3  ;;  %v1207_v58 = vadd.f32 %v1206_v54, %v2668_v32  ;;  %v1272_v43 = vrot.slane %v1246_v11, 3 }
 0x644   :  { %v1208_v59 = vpop.f32.mrf.mxu0  ;;  %v1248_v60 = vpop.f32.mrf.mxu1 }
 0x645   :  { %v1254_v61 = vadd.f32 %v1252_v57, %v2666_v31  ;;  %v1262_v3 = vrot.slane %v1207_v58, 3 }
 0x646   :  { %v1209_v62 = vpop.f32.mrf.mxu0  ;;  %v2002_v63 = vpop.f32.mrf.mxu1 }
 0x647   :  { %v1758_v2 = vmul.f32 -1.442695, %v1254_v61  ;;  %v1264_v4 = vadd.f32 %v1262_v3, %v2673_v41 }
 0x649   :  { %2201 = vpow2.f32 %v1758_v2  ;;  %v1759_v5 = vmul.f32 -1.442695, %v1264_v4 }
 0x64b   :  { %2203 = vpow2.f32 %v1759_v5 }
 0x656   :  { %v2202_v6 = vpop.eup %2201 }
 0x657   :  { %v1258_v7 = vadd.f32 1.0, %v2202_v6 }
 0x658   :  { %v2204_v9 = vpop.eup %2203 }
 0x659   :  { %2205 = vrcp.f32 %v1258_v7  ;;  %v1268_v42 = vadd.f32 1.0, %v2204_v9 }
 0x65b   :  { %2207 = vrcp.f32 %v1268_v42 }
 0x666   :  { %v2206_v52 = vpop.eup %2205 }
 0x667   :  { %v1274_v55 = vmul.f32 %v2206_v52, %v1272_v43 }
 0x668   :  { %v2208_v16 = vpop.eup %2207 }
 0x669   :  { %v1275_v10 = vadd.f32 %v1274_v55, %v2679_v21  ;;  %v1277_v17 = vsub.f32 1.0, %v2208_v16  ;;  %v1282_v22 = vmul.f32 %v2208_v16, %v1280_v19 }
 0x66b   :  { %2209 = vtanh.f32 %v1275_v10 }
 0x678   :  { %v2210_v15 = vpop.eup %2209 }
 0x679   :  { %v1278_v20 = vmul.f32 %v2210_v15, %v1277_v17 }
 0x67b   :  { %v2929_v24 = vadd.f32 %v1282_v22, %v1278_v20 }
 0x67d   :  { %v1284_v46 = vpack.c.bf16 %v2929_v24, %v2929_v24  ;;  %v2936_v27 = vsel %vm147_vm5, %v2886_v47, %v2929_v24  ;;  %v2252_v47 = vld [vmem:[#allocation9 + $0x38] ss:$12 sps:$4 sm:$0xff]   ;;  %v1400_v19 = vrot.slane %v2929_v24, 7 }
 0x67e   :  { %v2143_v24 = vld [vmem:[#allocation10 + $0x38] sm:$0xff]  }
 0x67f   :  { %v1286_v29 = vshrl.u32 %v1284_v46, 16 }
 0x681   :  { %v1288_v30 = vrot.slane %v1286_v29, 2 }
 0x683   :  { %1323 = vmatmul.mubr.bf16.vlgmr.msra.gmra.mxu0 %v1288_v30  ;;  %2020 = vmatmul.mubr.bf16.vlgmr.msra.gmra.mxu1 %v1288_v30 }
 0x684   :  { %1409 = vmatpush1.bf16.msra.mxu0 %v2236_v33  ;;  %2024 = vmatpush3.bf16.msra.mxu1 %v2237_v23  ;;  %v2144_v23 = vld [vmem:[#allocation10 + $0x30] sm:$0xff]  }
 0x685   :  { %1410 = vmatprep.subr.bf16.mxu0 %v2238_v25  ;;  %2025 = vmatprep.subr.bf16.mxu1 %v2408_v0  ;;  %v2145_v25 = vld [vmem:[#allocation10 + $0x28] sm:$0xff]  }
 0x686   :  { %1440 = vmatprep.mubr.bf16.mxu0 %v2409_v1  ;;  %2039 = vmatprep.mubr.msk.bf16.mxu1 %vm2410_vm0, %v2408_v0  ;;  %v2245_v1 = vld [vmem:[#allocation9 + $0x60] ss:$12 sps:$4 sm:$0xff]  }
 0x688   :  { %1411 = vmatpush1.bf16.msra.mxu0 %v2239_v18  ;;  %2026 = vmatpush3.bf16.msra.mxu1 %v2240_v34  ;;  %v2147_v18 = vld [vmem:[#allocation10 + $0x18] sm:$0xff]   ;;  %v2148_v34 = vld [vmem:[#allocation10 + $0x10] sm:$0xff]  }
 0x689   :  { %1412 = vmatprep.subr.bf16.mxu0 %v2241_v35  ;;  %2027 = vmatprep.subr.bf16.mxu1 %v2408_v0  ;;  %v2149_v35 = vld [vmem:[#allocation10 + $0x8] sm:$0xff]  }
 0x68c   :  { %1413 = vmatpush1.bf16.msra.mxu0 %v2242_v36  ;;  %2028 = vmatpush3.bf16.msra.mxu1 %v2243_v38  ;;  %v2150_v36 = vld [vmem:[#allocation10] sm:$0xff]  }
 0x68d   :  { %1414 = vmatprep.subr.bf16.mxu0 %v2244_v40  ;;  %2029 = vmatprep.subr.bf16.mxu1 %v2408_v0 }
 0x690   :  { %1415 = vmatpush1.bf16.msra.mxu0 %v2245_v1  ;;  %2030 = vmatpush3.bf16.msra.mxu1 %v2246_v26 }
 0x691   :  { %1416 = vmatprep.subr.bf16.mxu0 %v2247_v8  ;;  %2031 = vmatprep.subr.bf16.mxu1 %v2408_v0 }
 0x694   :  { %1417 = vmatpush1.bf16.msra.mxu0 %v2248_v44  ;;  %2032 = vmatpush3.bf16.msra.mxu1 %v2249_v45 }
 0x695   :  { %1418 = vmatprep.subr.bf16.mxu0 %v2250_v37  ;;  %2033 = vmatprep.subr.bf16.mxu1 %v2408_v0 }
 0x698   :  { %1419 = vmatpush1.bf16.msra.mxu0 %v2251_v39  ;;  %2034 = vmatpush3.bf16.msra.mxu1 %v2252_v47 }
 0x699   :  { %1420 = vmatprep.subr.bf16.mxu0 %v2253_v49  ;;  %2035 = vmatprep.subr.bf16.mxu1 %v2408_v0 }
 0x69c   :  { %1421 = vmatpush1.bf16.msra.mxu0 %v2254_v48  ;;  %2036 = vmatpush3.bf16.msra.mxu1 %v2614_v12 }
 0x69d   :  { %1422 = vmatprep.subr.bf16.mxu0 %v2255_v50  ;;  %2037 = vmatprep.subr.bf16.mxu1 %v2408_v0 }
 0x6a0   :  { %1423 = vmatpush1.bf16.msra.mxu0 %v2256_v51  ;;  %2038 = vmatpush3.bf16.msra.mxu1 %v2621_v13 }
 0x6a1   :  { %2043 = vmatprep.subr.bf16.mxu0 %v2408_v0 }
 0x743   :  { %v1324_v53 = vpop.f32.mrf.mxu0  ;;  %v1365_v54 = vpop.f32.mrf.mxu1 }
 0x744   :  { %v1325_v56 = vadd.f32 %v1324_v53, %v2664_v28  ;;  %v1366_v11 = vadd.f32 %v1365_v54, %v2676_v14 }
 0x745   :  { %v1326_v57 = vpop.f32.mrf.mxu0  ;;  %v2021_v58 = vpop.f32.mrf.mxu1 }
 0x746   :  { %v1372_v59 = vrot.slane %v1325_v56, 2  ;;  %v1327_v60 = vadd.f32 %v1326_v57, %v2668_v32  ;;  %v1392_v43 = vrot.slane %v1366_v11, 2 }
 0x747   :  { %v1328_v12 = vpop.f32.mrf.mxu0  ;;  %v1368_v61 = vpop.f32.mrf.mxu1 }
 0x748   :  { %v1374_v62 = vadd.f32 %v1372_v59, %v2666_v31  ;;  %v1382_v4 = vrot.slane %v1327_v60, 2 }
 0x749   :  { %v1329_v63 = vpop.f32.mrf.mxu0  ;;  %v2022_v2 = vpop.f32.mrf.mxu1 }
 0x74a   :  { %v1760_v3 = vmul.f32 -1.442695, %v1374_v62  ;;  %v1384_v13 = vadd.f32 %v1382_v4, %v2673_v41 }
 0x74c   :  { %2211 = vpow2.f32 %v1760_v3  ;;  %v1761_v5 = vmul.f32 -1.442695, %v1384_v13  ;;  %v1764_v13 = vld [vmem:[%s3002_s8] ss:$0 sm:$0xff] }
 0x74e   :  { %2213 = vpow2.f32 %v1761_v5 }
 0x759   :  { %v2212_v6 = vpop.eup %2211 }
 0x75a   :  { %v1378_v7 = vadd.f32 1.0, %v2212_v6 }
 0x75b   :  { %v2214_v9 = vpop.eup %2213 }
 0x75c   :  { %2215 = vrcp.f32 %v1378_v7  ;;  %v1388_v42 = vadd.f32 1.0, %v2214_v9 }
 0x75e   :  { %2217 = vrcp.f32 %v1388_v42 }
 0x769   :  { %v2216_v52 = vpop.eup %2215 }
 0x76a   :  { %v1394_v55 = vmul.f32 %v2216_v52, %v1392_v43 }
 0x76b   :  { %v2218_v16 = vpop.eup %2217 }
 0x76c   :  { %v1395_v10 = vadd.f32 %v1394_v55, %v2679_v21  ;;  %v1397_v17 = vsub.f32 1.0, %v2218_v16  ;;  %v1402_v22 = vmul.f32 %v2218_v16, %v1400_v19 }
 0x76e   :  { %2219 = vtanh.f32 %v1395_v10 }
 0x77b   :  { %v2220_v15 = vpop.eup %2219 }
 0x77c   :  { %v1398_v20 = vmul.f32 %v2220_v15, %v1397_v17 }
 0x77e   :  { %v2958_v46 = vadd.f32 %v1402_v22, %v1398_v20 }
 0x780   :  { %v1404_v29 = vpack.c.bf16 %v2958_v46, %v2958_v46  ;;  %v2965_v30 = vsel %vm149_vm6, %v2936_v27, %v2958_v46  ;;  %v2146_v27 = vld [vmem:[#allocation10 + $0x20] sm:$0xff]  }
 0x782   :  { %v1406_v33 = vrot.slane %v1404_v29, 3 }
 0x784   :  { %1441 = vmatmul.mubr.bf16.vlgmr.msra.gmra.mxu0 %v1406_v33  ;;  %2040 = vmatmul.mubr.bf16.vlgmr.msra.gmra.mxu1 %v1406_v33 }
 0x785   :  { %2059 = vmatprep.mubr.msk.bf16.mxu0 %vm2410_vm0, %v2408_v0  ;;  %2044 = vmatpush3.bf16.msra.mxu0 %v2143_v24 }
 0x786   :  { %2045 = vmatprep.subr.bf16.mxu0 %v2408_v0 }
 0x789   :  { %2046 = vmatpush3.bf16.msra.mxu0 %v2144_v23 }
 0x78a   :  { %2047 = vmatprep.subr.bf16.mxu0 %v2408_v0 }
 0x78d   :  { %2048 = vmatpush3.bf16.msra.mxu0 %v2145_v25 }
 0x78e   :  { %2049 = vmatprep.subr.bf16.mxu0 %v2408_v0 }
 0x791   :  { %2050 = vmatpush3.bf16.msra.mxu0 %v2146_v27 }
 0x792   :  { %2051 = vmatprep.subr.bf16.mxu0 %v2408_v0 }
 0x795   :  { %2052 = vmatpush3.bf16.msra.mxu0 %v2147_v18 }
 0x796   :  { %2053 = vmatprep.subr.bf16.mxu0 %v2408_v0 }
 0x799   :  { %2054 = vmatpush3.bf16.msra.mxu0 %v2148_v34 }
 0x79a   :  { %2055 = vmatprep.subr.bf16.mxu0 %v2408_v0 }
 0x79d   :  { %2056 = vmatpush3.bf16.msra.mxu0 %v2149_v35 }
 0x79e   :  { %2057 = vmatprep.subr.bf16.mxu0 %v2408_v0 }
 0x7a1   :  { %2058 = vmatpush3.bf16.msra.mxu0 %v2150_v36 }
 0x844   :  { %v1442_v38 = vpop.f32.mrf.mxu0  ;;  %v1483_v40 = vpop.f32.mrf.mxu1 }
 0x845   :  { %v1443_v1 = vadd.f32 %v1442_v38, %v2664_v28  ;;  %v1484_v57 = vadd.f32 %v1483_v40, %v2676_v14 }
 0x846   :  { %v1444_v26 = vpop.f32.mrf.mxu0  ;;  %v2041_v8 = vpop.f32.mrf.mxu1 }
 0x847   :  { %v1490_v44 = vrot.slane %v1443_v1, 1  ;;  %v1445_v45 = vadd.f32 %v1444_v26, %v2668_v32  ;;  %v1510_v58 = vrot.slane %v1484_v57, 1 }
 0x848   :  { %v1446_v37 = vpop.f32.mrf.mxu0  ;;  %v1486_v39 = vpop.f32.mrf.mxu1 }
 0x849   :  { %v1492_v47 = vadd.f32 %v1490_v44, %v2666_v31  ;;  %v1500_v51 = vrot.slane %v1445_v45, 1 }
 0x84a   :  { %v1447_v49 = vpop.f32.mrf.mxu0  ;;  %v2042_v48 = vpop.f32.mrf.mxu1 }
 0x84b   :  { %v1762_v50 = vmul.f32 -1.442695, %v1492_v47  ;;  %v1502_v0 = vadd.f32 %v1500_v51, %v2673_v41  ;;  %v1518_v41 = vrot.slane %v2958_v46, 7 }
 0x84d   :  { %2221 = vpow2.f32 %v1762_v50  ;;  %v1763_v53 = vmul.f32 -1.442695, %v1502_v0 }
 0x84f   :  { %2223 = vpow2.f32 %v1763_v53 }
 0x85a   :  { %v2222_v54 = vpop.eup %2221 }
 0x85b   :  { %v1496_v28 = vadd.f32 1.0, %v2222_v54 }
 0x85c   :  { %v2224_v56 = vpop.eup %2223 }
 0x85d   :  { %2225 = vrcp.f32 %v1496_v28  ;;  %v1506_v32 = vadd.f32 1.0, %v2224_v56 }
 0x85f   :  { %2227 = vrcp.f32 %v1506_v32 }
 0x86a   :  { %v2226_v59 = vpop.eup %2225 }
 0x86b   :  { %v1512_v60 = vmul.f32 %v2226_v59, %v1510_v58 }
 0x86c   :  { %v2228_v12 = vpop.eup %2227 }
 0x86d   :  { %v1513_v31 = vadd.f32 %v1512_v60, %v2679_v21  ;;  %v1515_v61 = vsub.f32 1.0, %v2228_v12  ;;  %v1520_v2 = vmul.f32 %v2228_v12, %v1518_v41 }
 0x86f   :  { %2229 = vtanh.f32 %v1513_v31 }
 0x87c   :  { %v2230_v62 = vpop.eup %2229 }
 0x87d   :  { %v1516_v63 = vmul.f32 %v2230_v62, %v1515_v61 }
 0x87f   :  { %v1521_v3 = vadd.f32 %v1520_v2, %v1516_v63 }
 0x881   :  { %v1528_v4 = vsel %vm151_vm7, %v2965_v30, %v1521_v3  ;;  %1653 = vst [vmem:[#allocation13 - $0x7] sm:$0x80] %v1521_v3 }
 0x882   :  { %v1529_v14 = vpack.c.bf16 %v1528_v4, %v1528_v4 }
 0x884   :  { %2060 = vmatmul.mubr.bf16.vlgmr.msra.gmra.mxu0 %v1529_v14 }
 0x944   :  { %v1635_v21 = vpop.f32.mrf.mxu0 }
 0x945   :  { %v1636_v5 = vadd.f32 %v1764_v13, %v1635_v21 }
 0x946   :  { %v2061_v6 = vpop.f32.mrf.mxu0 }
 0x947   :  { %1641 = vmax.xlane.f32.xlu0 %v1636_v5 }
 0x948   :  { %v1638_v7 = vpop.f32.mrf.mxu0 }
 0x94a   :  { %v2062_v9 = vpop.f32.mrf.mxu0 }
 0x9d0   :  { %v1642_v11 = vpop.xlane.xlu0 %1641 }
 0x9d1   :  { %v1643_v42 = vsub.f32 %v1636_v5, %v1642_v11 }
 0x9d3   :  { %v1644_v43 = vmul.f32 1.442695, %v1643_v42 }
 0x9d5   :  { %2231 = vpow2.f32 %v1644_v43 }
 0x9e2   :  { %v2232_v52 = vpop.eup %2231 }
 0x9e3   :  { %1646 = vadd.xlane.f32.xlu0 %v2232_v52 }
 0x9e4   :  { %2356 = shalt.err (!%p2353_p10)
}
 0x9e5   :  { %1673 = dma.vmem_to_hbm [thread:$0]  %s1671_s16, 16, %s3004_s10, [#allocation14]  }
 0x9e6   :  { %s2412_s19 = smov [#allocation12]  }
 0x9e7   :  { %s1660_s7 = sshll.u32 %s2412_s19, 4  ;;  %s1661_s7 = int_to_ptr.vmem [resolvable:$true] %s1660_s7 }
 0x9e8   :  { %s2365_s0 = scalar_lea.vmem %s1661_s7, 128  ;;  %p2370_p12 = scmp.lt.s32.totalorder %s1661_s7, %s1661_s7 }
 0x9e9   :  { %p2366_p11 = scmp.ne.s32.totalorder %s1661_s7, %s2365_s0  ;;  %p2371_p13 = scmp.lt.s32.totalorder %s2365_s0, %s2365_s0 }
 0x9eb   :  { %p2372_p0 = por %p2371_p13, %p2370_p12 }
 0x9ed   :  { %p2373_p1 = pnand %p2372_p0, %p2366_p11 }
 0xa6c   :  { %v1647_v55 = vpop.xlane.xlu0 %1646 }
 0xa6d   :  { %2233 = vlog2.f32 %v1647_v55 }
 0xa7a   :  { %v2234_v10 = vpop.eup %2233 }
 0xa7b   :  { %v1649_v16 = vmul.f32 0.6931472, %v2234_v10 }
 0xa7d   :  { %v1650_v17 = vadd.f32 %v1649_v16, %v1642_v11 }
 0xa7f   :  { %v1651_v19 = vsub.f32 %v1636_v5, %v1650_v17 }
 0xa81   :  { %1652 = vst [vmem:[#allocation12] sm:$0xff] %v1651_v19 }
 0xa82   :  { %2376 = shalt.err (!%p2373_p1)
}
 0xa83   :  { %1663 = dma.vmem_to_hbm [thread:$0]  %s1661_s7, 128, %s3003_s9, [#allocation6]  }
 0xa84   :  { %2393 = dma.done.wait [#allocation6], 128  }
 0xa85   :  { %2394 = vsyncadd [#allocation6], 4294967168 }
 0xa86   :  { %2395 = dma.done.wait [#allocation14], 16  }
 0xa87   :  { %2396 = vsyncadd [#allocation14], 4294967280 }
 0xa88   :  { %1680 = vsyncpa [#allocation5], 1 }
 0xa89   :  { %1681 = vsyncpa [#allocation8], 1 }
 0xa8a   :  { %1682 = vsyncpa [#allocation11], 1 }
 0xa8b   :  { %1683 = vsyncpa [#allocation6], 1 }
 0xa8c   :  { %1684 = vsyncpa [#allocation14], 1 }

</bundles_post_ra>
